<compile_context>
chip_gen: v7x
topology: tpu7x:2x2x1
jax: 0.10.0
libtpu: 0.0.40
codegen_flags: <defaults>
</compile_context>

<pallas_src>
from functools import partial

import numpy as np
import jax
import jax.numpy as jnp
from jax.experimental import pallas as pl
from jax.experimental.pallas import tpu as pltpu


# ----------------------------- padded widths --------------------------------

FP = 128        # padded conv-feature width (lane-dense)
NWAY_P = 128    # padded class width (lane-dense)
NCP_P = 128     # padded context-param width (lane-dense)
NEG = -1.0e9    # bias for padded classes: never wins softmax / argmax


# --------------------------- feature-path kernel ----------------------------

def _feat_pool_kernel(p_ref, w_ref, b_ref, o_ref):
    """relu(patches @ W1 + b1) followed by the fused global average pool.

    One grid step == one image: block (1, H*W, K) in, (1, 1, FP) out.
    """
    acc = jnp.dot(p_ref[0], w_ref[...], preferred_element_type=jnp.float32)
    acc = jnp.maximum(acc + b_ref[...], 0.0)                  # (H*W, FP) f32
    o_ref[0] = jnp.mean(acc, axis=0, keepdims=True)           # (1, FP)


def conv_pool_features(x_nchw, w1, b1):
    """conv3x3 (im2col matmul) + ReLU + global-avg-pool for ALL images."""
    N, C, H, W = x_nchw.shape
    x_nhwc = jnp.transpose(x_nchw, (0, 2, 3, 1))
    # NHWC in / NHWC out => patches come out channel-minor, no big transpose.
    patches = jax.lax.conv_general_dilated_patches(
        x_nhwc, filter_shape=(3, 3), window_strides=(1, 1), padding='SAME',
        dimension_numbers=('NHWC', 'HWIO', 'NHWC'))           # (N, H, W, C*9)
    K = patches.shape[-1]
    patches = patches.reshape(N, H * W, K).astype(jnp.bfloat16)

    F = w1.shape[1]
    w1_p = jnp.zeros((K, FP), jnp.float32).at[:, :F].set(w1).astype(jnp.bfloat16)
    b1_p = jnp.zeros((1, FP), jnp.float32).at[0, :F].set(b1)

    feats = pl.pallas_call(
        _feat_pool_kernel,
        out_shape=jax.ShapeDtypeStruct((N, 1, FP), jnp.float32),
        grid_spec=pltpu.PrefetchScalarGridSpec(
            num_scalar_prefetch=0, grid=(N,),
            in_specs=[pl.BlockSpec((1, H * W, K), lambda n: (n, 0, 0)),
                      pl.BlockSpec((K, FP), lambda n: (0, 0)),
                      pl.BlockSpec((1, FP), lambda n: (0, 0))],
            out_specs=pl.BlockSpec((1, 1, FP), lambda n: (n, 0, 0))),
        compiler_params=pltpu.CompilerParams(
            dimension_semantics=("parallel",)),
    )(patches, w1_p, b1_p)
    return feats[:, 0, :]                                     # (N, FP)


# ------------------------ fused per-task inner loop --------------------------

def _make_task_kernel(inner_lr, update_step, setsz):
    inv_n = 1.0 / float(setsz)

    def task_kernel(fs_ref, fq_ref, yoh_ref, yq_ref,
                    wf_ref, wc_ref, wct_ref, b_ref, cnt_ref):
        fs, fq = fs_ref[0], fq_ref[0]                 # (setsz|qsz, FP)
        yoh, yq = yoh_ref[0], yq_ref[0]               # (setsz, NWAY_P), (qsz, 1)
        wf, wc = wf_ref[...], wc_ref[...]
        wct, b = wct_ref[...], b_ref[...]

        # ctx-independent pieces of the logits, hoisted out of the inner loop.
        base_s = jnp.dot(fs, wf, preferred_element_type=jnp.float32) + b
        base_q = jnp.dot(fq, wf, preferred_element_type=jnp.float32) + b

        col_q = jax.lax.broadcasted_iota(jnp.int32, base_q.shape, 1)
        lane = jax.lax.broadcasted_iota(jnp.int32, (1, 128), 1)

        def q_correct(ctx):
            # forward-only query eval: argmax + correct count, no softmax/grad
            lq = base_q + jnp.dot(ctx, wc, preferred_element_type=jnp.float32)
            mval = jnp.max(lq, axis=-1, keepdims=True)
            pred = jnp.min(jnp.where(lq == mval, col_q, NWAY_P),
                           axis=-1, keepdims=True)             # (qsz, 1)
            return jnp.sum((pred == yq).astype(jnp.float32))

        ctx0 = jnp.zeros((1, NCP_P), jnp.float32)              # reset_context_params
        counts0 = jnp.where(lane == 0, q_correct(ctx0), 0.0)   # corrects[0]

        def body(k, carry):
            ctx, counts = carry
            # CE on the support set; analytic grad w.r.t. the context params.
            ls = base_s + jnp.dot(ctx, wc, preferred_element_type=jnp.float32)
            m = jnp.max(ls, axis=-1, keepdims=True)
            e = jnp.exp(ls - m)
            p = e * pl.reciprocal(jnp.sum(e, axis=-1, keepdims=True),
                                  approx=True)
            g = jnp.sum(p - yoh, axis=0, keepdims=True) * inv_n   # (1, NWAY_P)
            gctx = jnp.dot(g, wct, preferred_element_type=jnp.float32)
            ctx = ctx - inner_lr * gctx
            counts = counts + jnp.where(lane == (k + 1), q_correct(ctx), 0.0)
            return ctx, counts

        _, counts = jax.lax.fori_loop(0, update_step, body, (ctx0, counts0),
                                      unroll=True)
        cnt_ref[0] = counts                                     # (1, 128) lane-dense
    return task_kernel


def cavia_inner_loop(feat_s, feat_q, yoh_s, yq, wf_p, wc_p, wct_p, b_p,
                     inner_lr, update_step):
    T, setsz, _ = feat_s.shape
    qsz = feat_q.shape[1]
    kernel = _make_task_kernel(inner_lr, update_step, setsz)
    counts = pl.pallas_call(
        kernel,
        out_shape=jax.ShapeDtypeStruct((T, 1, 128), jnp.float32),
        grid_spec=pltpu.PrefetchScalarGridSpec(
            num_scalar_prefetch=0, grid=(T,),
            in_specs=[pl.BlockSpec((1, setsz, FP), lambda t: (t, 0, 0)),
                      pl.BlockSpec((1, qsz, FP), lambda t: (t, 0, 0)),
                      pl.BlockSpec((1, setsz, NWAY_P), lambda t: (t, 0, 0)),
                      pl.BlockSpec((1, qsz, 1), lambda t: (t, 0, 0)),
                      pl.BlockSpec((FP, NWAY_P), lambda t: (0, 0)),
                      pl.BlockSpec((NCP_P, NWAY_P), lambda t: (0, 0)),
                      pl.BlockSpec((NWAY_P, NCP_P), lambda t: (0, 0)),
                      pl.BlockSpec((1, NWAY_P), lambda t: (0, 0))],
            out_specs=pl.BlockSpec((1, 1, 128), lambda t: (t, 0, 0))),
        compiler_params=pltpu.CompilerParams(
            dimension_semantics=("parallel",)),   # tasks across TCs on v7x
    )(feat_s, feat_q, yoh_s, yq, wf_p, wc_p, wct_p, b_p)
    return counts[:, 0, :]                                      # (T, 128)


# ------------------------------ Meta.forward --------------------------------

@partial(jax.jit, static_argnames=("inner_lr", "update_step", "n_way", "log"))
def meta_forward(params, x_spt, y_spt, x_qry, y_qry, *,
                 inner_lr, update_step, n_way, log=True):
    T, setsz = x_spt.shape[:2]
    qsz = x_qry.shape[1]
    C, H, W = x_spt.shape[2:]

    if not log:
        # original forward only accumulates `corrects` when log=True
        return jnp.zeros((update_step + 1,), jnp.float32)

    # ---- feature path: every task's support+query images in one batched call
    x_all = jnp.concatenate([x_spt.reshape(T * setsz, C, H, W),
                             x_qry.reshape(T * qsz, C, H, W)], axis=0)
    feats = conv_pool_features(x_all, params['w1'], params['b1'])  # (N_total, FP)
    feat_s = feats[:T * setsz].reshape(T, setsz, FP)
    feat_q = feats[T * setsz:].reshape(T, qsz, FP)

    # ---- lane-dense (128-padded) classifier params; padded classes get a
    # huge negative bias so they can never win the softmax / argmax.
    F = params['wf'].shape[0]
    ncp = params['wc'].shape[0]
    wf_p = jnp.zeros((FP, NWAY_P), jnp.float32).at[:F, :n_way].set(params['wf'])
    wc_p = jnp.zeros((NCP_P, NWAY_P), jnp.float32).at[:ncp, :n_way].set(params['wc'])
    wct_p = wc_p.T                      # derived from wc => can never drift
    b_p = jnp.full((1, NWAY_P), NEG, jnp.float32).at[0, :n_way].set(params['b2'])

    yoh_s = jax.nn.one_hot(y_spt, NWAY_P, dtype=jnp.float32)       # (T, setsz, 128)
    yq = y_qry.astype(jnp.int32).reshape(T, qsz, 1)

    counts = cavia_inner_loop(feat_s, feat_q, yoh_s, yq,
                              wf_p, wc_p, wct_p, b_p, inner_lr, update_step)

    # TODO(synk): outer-loop (second-order) meta-gradients w.r.t. the net
    # parameters, grad clamp, masked Adam step and StepLR scheduler have no
    # clean Pallas equivalent here (optimizer state / autodiff machinery).

    accs = jnp.sum(counts[:, :update_step + 1], axis=0) / float(qsz * T)
    return accs


# --------------------------------- driver ------------------------------------

if __name__ == "__main__":
    task_num = 2
    n_way = 5
    k_spt, k_qry = 1, 2
    setsz = n_way * k_spt          # 5
    querysz = n_way * k_qry        # 10
    C, H, W = 4, 16, 16
    F = 32                         # conv feature channels
    ncp = 8                        # num_context_params
    inner_lr = 0.4
    update_step = 3

    key = jax.random.PRNGKey(0)
    k_x1, k_x2, k_y1, k_y2, k_w1, k_wf, k_wc, k_b1, k_b2 = jax.random.split(key, 9)

    x_spt = jax.random.normal(k_x1, (task_num, setsz, C, H, W), jnp.float32)
    x_qry = jax.random.normal(k_x2, (task_num, querysz, C, H, W), jnp.float32)
    y_spt = jax.random.randint(k_y1, (task_num, setsz), 0, n_way)
    y_qry = jax.random.randint(k_y2, (task_num, querysz), 0, n_way)

    Kdim = C * 3 * 3
    params = {
        'w1': jax.random.normal(k_w1, (Kdim, F), jnp.float32) * (1.0 / np.sqrt(Kdim)),
        'b1': jax.random.normal(k_b1, (F,), jnp.float32) * 0.01,
        'wf': jax.random.normal(k_wf, (F, n_way), jnp.float32) * (1.0 / np.sqrt(F)),
        'wc': jax.random.normal(k_wc, (ncp, n_way), jnp.float32) * 0.1,
        'b2': jax.random.normal(k_b2, (n_way,), jnp.float32) * 0.01,
    }

    accs = meta_forward(params, x_spt, y_spt, x_qry, y_qry,
                        inner_lr=inner_lr, update_step=update_step,
                        n_way=n_way, log=True)
    accs = jax.block_until_ready(accs)

    accs_np = np.asarray(accs)
    assert accs_np.shape == (update_step + 1,)
    assert np.all(accs_np >= 0.0) and np.all(accs_np <= 1.0)
    # per-step correct counts must be (near-)integers
    raw = accs_np * (querysz * task_num)
    assert np.allclose(raw, np.round(raw), atol=1e-3)
    print("KERNEL_OK")
</pallas_src>

<mosaic_0001>
module attributes {stable_mosaic.version = 11 : i64} {
  func.func @_feat_pool_kernel(%arg0: i32, %arg1: memref<1x256x36xbf16, #tpu.memory_space<vmem>>, %arg2: memref<36x128xbf16, #tpu.memory_space<vmem>>, %arg3: memref<1x128xf32, #tpu.memory_space<vmem>>, %arg4: memref<1x1x128xf32, #tpu.memory_space<vmem>>) attributes {dimension_semantics = [#tpu.dimension_semantics<parallel>], iteration_bounds = array<i64: 30>, scalar_prefetch = 0 : i64, scratch_operands = 0 : i64, tpu.core_type = #tpu.core_type<tc>, window_params = [{transform_indices = @transform_0, window_bounds = array<i64: 1, 256, 36>}, {pipeline_mode = #tpu.pipeline_mode<synchronous>, transform_indices = @transform_1, window_bounds = array<i64: 36, 128>}, {pipeline_mode = #tpu.pipeline_mode<synchronous>, transform_indices = @transform_2, window_bounds = array<i64: 1, 128>}, {transform_indices = @transform_3, window_bounds = array<i64: 1, 1, 128>}]} {
    %c0 = arith.constant 0 : index
    %c0_0 = arith.constant 0 : index
    %c0_1 = arith.constant 0 : index
    %0 = vector.load %arg1[%c0, %c0_0, %c0_1] : memref<1x256x36xbf16, #tpu.memory_space<vmem>>, vector<1x256x36xbf16>
    %1 = vector.shape_cast %0 : vector<1x256x36xbf16> to vector<256x36xbf16>
    %c0_2 = arith.constant 0 : index
    %c0_3 = arith.constant 0 : index
    %2 = vector.load %arg2[%c0_2, %c0_3] : memref<36x128xbf16, #tpu.memory_space<vmem>>, vector<36x128xbf16>
    %cst = arith.constant dense<0.000000e+00> : vector<256x128xf32>
    %3 = tpu.matmul %1, %2, %cst {dimension_numbers = #tpu.dot_dimension_numbers<[1], [0], [0], [1], [0, 0, 1, 1], [], []>} : vector<256x36xbf16>, vector<36x128xbf16>, vector<256x128xf32> -> vector<256x128xf32>
    %c0_4 = arith.constant 0 : index
    %c0_5 = arith.constant 0 : index
    %4 = vector.load %arg3[%c0_4, %c0_5] : memref<1x128xf32, #tpu.memory_space<vmem>>, vector<1x128xf32>
    %5 = vector.broadcast %4 : vector<1x128xf32> to vector<256x128xf32>
    %6 = arith.addf %3, %5 : vector<256x128xf32>
    %cst_6 = arith.constant 0.000000e+00 : f32
    %7 = vector.broadcast %cst_6 : f32 to vector<256x128xf32>
    %8 = arith.maximumf %6, %7 : vector<256x128xf32>
    %cst_7 = arith.constant dense<0.000000e+00> : vector<128xf32>
    %9 = vector.multi_reduction <add>, %8, %cst_7 [0] : vector<256x128xf32> to vector<128xf32>
    %10 = vector.shape_cast %9 : vector<128xf32> to vector<1x128xf32>
    %cst_8 = arith.constant 2.560000e+02 : f32
    %11 = vector.broadcast %cst_8 : f32 to vector<1x128xf32>
    %12 = arith.divf %10, %11 : vector<1x128xf32>
    %c0_9 = arith.constant 0 : index
    %c0_10 = arith.constant 0 : index
    %c0_11 = arith.constant 0 : index
    %13 = vector.load %arg4[%c0_9, %c0_10, %c0_11] : memref<1x1x128xf32, #tpu.memory_space<vmem>>, vector<1x1x128xf32>
    %14 = vector.shape_cast %13 : vector<1x1x128xf32> to vector<1x128xf32>
    %15 = vector.shape_cast %12 : vector<1x128xf32> to vector<1x1x128xf32>
    tpu.vector_store %arg4[%c0_9, %c0_10, %c0_11], %15 {strides = array<i32>} : memref<1x1x128xf32, #tpu.memory_space<vmem>>, vector<1x1x128xf32>,
    return
  }
  func.func @transform_0(%arg0: i32) -> (i32, i32, i32) {
    %c0_i32 = arith.constant 0 : i32
    %c0_i32_0 = arith.constant 0 : i32
    %c0_i32_1 = arith.constant 0 : i32
    return %arg0, %c0_i32, %c0_i32_0 : i32, i32, i32
  }
  func.func @transform_1(%arg0: i32) -> (i32, i32) {
    %c0_i32 = arith.constant 0 : i32
    %c0_i32_0 = arith.constant 0 : i32
    %c0_i32_1 = arith.constant 0 : i32
    return %c0_i32, %c0_i32_0 : i32, i32
  }
  func.func @transform_2(%arg0: i32) -> (i32, i32) {
    %c0_i32 = arith.constant 0 : i32
    %c0_i32_0 = arith.constant 0 : i32
    %c0_i32_1 = arith.constant 0 : i32
    return %c0_i32, %c0_i32_0 : i32, i32
  }
  func.func @transform_3(%arg0: i32) -> (i32, i32, i32) {
    %c0_i32 = arith.constant 0 : i32
    %c0_i32_0 = arith.constant 0 : i32
    %c0_i32_1 = arith.constant 0 : i32
    return %arg0, %c0_i32, %c0_i32_0 : i32, i32, i32
  }
}

module attributes {stable_mosaic.version = 11 : i64} {
  func.func @task_kernel(%arg0: i32, %arg1: memref<1x5x128xf32, #tpu.memory_space<vmem>>, %arg2: memref<1x10x128xf32, #tpu.memory_space<vmem>>, %arg3: memref<1x5x128xf32, #tpu.memory_space<vmem>>, %arg4: memref<1x10x1xi32, #tpu.memory_space<vmem>>, %arg5: memref<128x128xf32, #tpu.memory_space<vmem>>, %arg6: memref<128x128xf32, #tpu.memory_space<vmem>>, %arg7: memref<128x128xf32, #tpu.memory_space<vmem>>, %arg8: memref<1x128xf32, #tpu.memory_space<vmem>>, %arg9: memref<1x1x128xf32, #tpu.memory_space<vmem>>) attributes {dimension_semantics = [#tpu.dimension_semantics<parallel>], iteration_bounds = array<i64: 2>, scalar_prefetch = 0 : i64, scratch_operands = 0 : i64, tpu.core_type = #tpu.core_type<tc>, window_params = [{transform_indices = @transform_0, window_bounds = array<i64: 1, 5, 128>}, {transform_indices = @transform_1, window_bounds = array<i64: 1, 10, 128>}, {transform_indices = @transform_2, window_bounds = array<i64: 1, 5, 128>}, {transform_indices = @transform_3, window_bounds = array<i64: 1, 10, 1>}, {pipeline_mode = #tpu.pipeline_mode<synchronous>, transform_indices = @transform_4, window_bounds = array<i64: 128, 128>}, {pipeline_mode = #tpu.pipeline_mode<synchronous>, transform_indices = @transform_5, window_bounds = array<i64: 128, 128>}, {pipeline_mode = #tpu.pipeline_mode<synchronous>, transform_indices = @transform_6, window_bounds = array<i64: 128, 128>}, {pipeline_mode = #tpu.pipeline_mode<synchronous>, transform_indices = @transform_7, window_bounds = array<i64: 1, 128>}, {transform_indices = @transform_8, window_bounds = array<i64: 1, 1, 128>}]} {
    %c0 = arith.constant 0 : index
    %c0_0 = arith.constant 0 : index
    %c0_1 = arith.constant 0 : index
    %0 = vector.load %arg1[%c0, %c0_0, %c0_1] : memref<1x5x128xf32, #tpu.memory_space<vmem>>, vector<1x5x128xf32>
    %1 = vector.shape_cast %0 : vector<1x5x128xf32> to vector<5x128xf32>
    %c0_2 = arith.constant 0 : index
    %c0_3 = arith.constant 0 : index
    %c0_4 = arith.constant 0 : index
    %2 = vector.load %arg2[%c0_2, %c0_3, %c0_4] : memref<1x10x128xf32, #tpu.memory_space<vmem>>, vector<1x10x128xf32>
    %3 = vector.shape_cast %2 : vector<1x10x128xf32> to vector<10x128xf32>
    %c0_5 = arith.constant 0 : index
    %c0_6 = arith.constant 0 : index
    %c0_7 = arith.constant 0 : index
    %4 = vector.load %arg3[%c0_5, %c0_6, %c0_7] : memref<1x5x128xf32, #tpu.memory_space<vmem>>, vector<1x5x128xf32>
    %5 = vector.shape_cast %4 : vector<1x5x128xf32> to vector<5x128xf32>
    %c0_8 = arith.constant 0 : index
    %c0_9 = arith.constant 0 : index
    %c0_10 = arith.constant 0 : index
    %6 = vector.load %arg4[%c0_8, %c0_9, %c0_10] : memref<1x10x1xi32, #tpu.memory_space<vmem>>, vector<1x10x1xi32>
    %7 = vector.shape_cast %6 : vector<1x10x1xi32> to vector<10x1xi32>
    %c0_11 = arith.constant 0 : index
    %c0_12 = arith.constant 0 : index
    %8 = vector.load %arg5[%c0_11, %c0_12] : memref<128x128xf32, #tpu.memory_space<vmem>>, vector<128x128xf32>
    %c0_13 = arith.constant 0 : index
    %c0_14 = arith.constant 0 : index
    %9 = vector.load %arg6[%c0_13, %c0_14] : memref<128x128xf32, #tpu.memory_space<vmem>>, vector<128x128xf32>
    %c0_15 = arith.constant 0 : index
    %c0_16 = arith.constant 0 : index
    %10 = vector.load %arg7[%c0_15, %c0_16] : memref<128x128xf32, #tpu.memory_space<vmem>>, vector<128x128xf32>
    %c0_17 = arith.constant 0 : index
    %c0_18 = arith.constant 0 : index
    %11 = vector.load %arg8[%c0_17, %c0_18] : memref<1x128xf32, #tpu.memory_space<vmem>>, vector<1x128xf32>
    %cst = arith.constant dense<0.000000e+00> : vector<5x128xf32>
    %12 = tpu.matmul %1, %8, %cst {dimension_numbers = #tpu.dot_dimension_numbers<[1], [0], [0], [1], [0, 0, 1, 1], [], []>} : vector<5x128xf32>, vector<128x128xf32>, vector<5x128xf32> -> vector<5x128xf32>
    %13 = vector.broadcast %11 : vector<1x128xf32> to vector<5x128xf32>
    %14 = arith.addf %12, %13 : vector<5x128xf32>
    %cst_19 = arith.constant dense<0.000000e+00> : vector<10x128xf32>
    %15 = tpu.matmul %3, %8, %cst_19 {dimension_numbers = #tpu.dot_dimension_numbers<[1], [0], [0], [1], [0, 0, 1, 1], [], []>} : vector<10x128xf32>, vector<128x128xf32>, vector<10x128xf32> -> vector<10x128xf32>
    %16 = vector.broadcast %11 : vector<1x128xf32> to vector<10x128xf32>
    %17 = arith.addf %15, %16 : vector<10x128xf32>
    %18 = tpu.iota {dimensions = array<i32: 1>} : vector<10x128xi32>
    %19 = tpu.iota {dimensions = array<i32: 1>} : vector<1x128xi32>
    %cst_20 = arith.constant 0.000000e+00 : f32
    %20 = vector.broadcast %cst_20 : f32 to vector<1x128xf32>
    %c0_i32 = arith.constant 0 : i32
    %21 = vector.broadcast %c0_i32 : i32 to vector<1x128xi32>
    %22 = arith.cmpi eq, %19, %21 : vector<1x128xi32>
    %cst_21 = arith.constant dense<0.000000e+00> : vector<1x128xf32>
    %23 = tpu.matmul %20, %9, %cst_21 {dimension_numbers = #tpu.dot_dimension_numbers<[1], [0], [0], [1], [0, 0, 1, 1], [], []>} : vector<1x128xf32>, vector<128x128xf32>, vector<1x128xf32> -> vector<1x128xf32>
    %24 = vector.broadcast %23 : vector<1x128xf32> to vector<10x128xf32>
    %25 = arith.addf %17, %24 : vector<10x128xf32>
    %cst_22 = arith.constant dense<0xFF800000> : vector<10xf32>
    %26 = vector.multi_reduction <maximumf>, %25, %cst_22 [1] : vector<10x128xf32> to vector<10xf32>
    %27 = vector.shape_cast %26 : vector<10xf32> to vector<10x1xf32>
    %28 = vector.broadcast %27 : vector<10x1xf32> to vector<10x128xf32>
    %29 = arith.cmpf oeq, %25, %28 : vector<10x128xf32>
    %c128_i32 = arith.constant 128 : i32
    %30 = vector.broadcast %c128_i32 : i32 to vector<10x128xi32>
    %31 = arith.select %29, %18, %30 : vector<10x128xi1>, vector<10x128xi32>
    %cst_23 = arith.constant dense<2147483647> : vector<10xi32>
    %32 = vector.multi_reduction <minsi>, %31, %cst_23 [1] : vector<10x128xi32> to vector<10xi32>
    %33 = vector.shape_cast %32 : vector<10xi32> to vector<10x1xi32>
    %34 = arith.cmpi eq, %33, %7 : vector<10x1xi32>
    %35 = arith.extui %34 : vector<10x1xi1> to vector<10x1xi32>
    %36 = arith.sitofp %35 : vector<10x1xi32> to vector<10x1xf32>
    %37 = vector.shape_cast %36 : vector<10x1xf32> to vector<1x10x1xf32>
    %cst_24 = arith.constant dense<0.000000e+00> : vector<1xf32>
    %38 = vector.multi_reduction <add>, %37, %cst_24 [1, 2] : vector<1x10x1xf32> to vector<1xf32>
    %39 = vector.shape_cast %38 : vector<1xf32> to vector<1x1x1xf32>
    %40 = vector.extract %39[0, 0, 0] : f32 from vector<1x1x1xf32>
    %cst_25 = arith.constant 0.000000e+00 : f32
    %41 = vector.broadcast %40 : f32 to vector<1x128xf32>
    %42 = vector.broadcast %cst_25 : f32 to vector<1x128xf32>
    %43 = arith.select %22, %41, %42 : vector<1x128xi1>, vector<1x128xf32>
    %c0_i32_26 = arith.constant 0 : i32
    %cst_27 = arith.constant dense<0.000000e+00> : vector<1x128xf32>
    %44 = tpu.matmul %20, %9, %cst_27 {dimension_numbers = #tpu.dot_dimension_numbers<[1], [0], [0], [1], [0, 0, 1, 1], [], []>} : vector<1x128xf32>, vector<128x128xf32>, vector<1x128xf32> -> vector<1x128xf32>
    %45 = vector.broadcast %44 : vector<1x128xf32> to vector<5x128xf32>
    %46 = arith.addf %14, %45 : vector<5x128xf32>
    %cst_28 = arith.constant dense<0xFF800000> : vector<5xf32>
    %47 = vector.multi_reduction <maximumf>, %46, %cst_28 [1] : vector<5x128xf32> to vector<5xf32>
    %48 = vector.shape_cast %47 : vector<5xf32> to vector<5x1xf32>
    %49 = vector.broadcast %48 : vector<5x1xf32> to vector<5x128xf32>
    %50 = arith.subf %46, %49 : vector<5x128xf32>
    %51 = math.exp %50 : vector<5x128xf32>
    %cst_29 = arith.constant dense<0.000000e+00> : vector<5xf32>
    %52 = vector.multi_reduction <add>, %51, %cst_29 [1] : vector<5x128xf32> to vector<5xf32>
    %53 = vector.shape_cast %52 : vector<5xf32> to vector<5x1xf32>
    %54 = tpu.reciprocal %53 {approx = true} : vector<5x1xf32> -> vector<5x1xf32>
    %55 = vector.broadcast %54 : vector<5x1xf32> to vector<5x128xf32>
    %56 = arith.mulf %51, %55 : vector<5x128xf32>
    %57 = arith.subf %56, %5 : vector<5x128xf32>
    %cst_30 = arith.constant dense<0.000000e+00> : vector<128xf32>
    %58 = vector.multi_reduction <add>, %57, %cst_30 [0] : vector<5x128xf32> to vector<128xf32>
    %59 = vector.shape_cast %58 : vector<128xf32> to vector<1x128xf32>
    %cst_31 = arith.constant 2.000000e-01 : f32
    %60 = vector.broadcast %cst_31 : f32 to vector<1x128xf32>
    %61 = arith.mulf %59, %60 : vector<1x128xf32>
    %cst_32 = arith.constant dense<0.000000e+00> : vector<1x128xf32>
    %62 = tpu.matmul %61, %10, %cst_32 {dimension_numbers = #tpu.dot_dimension_numbers<[1], [0], [0], [1], [0, 0, 1, 1], [], []>} : vector<1x128xf32>, vector<128x128xf32>, vector<1x128xf32> -> vector<1x128xf32>
    %cst_33 = arith.constant 4.000000e-01 : f32
    %63 = vector.broadcast %cst_33 : f32 to vector<1x128xf32>
    %64 = arith.mulf %63, %62 : vector<1x128xf32>
    %65 = arith.subf %20, %64 : vector<1x128xf32>
    %c1_i32 = arith.constant 1 : i32
    %66 = arith.addi %c0_i32_26, %c1_i32 : i32
    %67 = vector.broadcast %66 : i32 to vector<1x128xi32>
    %68 = arith.cmpi eq, %19, %67 : vector<1x128xi32>
    %cst_34 = arith.constant dense<0.000000e+00> : vector<1x128xf32>
    %69 = tpu.matmul %65, %9, %cst_34 {dimension_numbers = #tpu.dot_dimension_numbers<[1], [0], [0], [1], [0, 0, 1, 1], [], []>} : vector<1x128xf32>, vector<128x128xf32>, vector<1x128xf32> -> vector<1x128xf32>
    %70 = vector.broadcast %69 : vector<1x128xf32> to vector<10x128xf32>
    %71 = arith.addf %17, %70 : vector<10x128xf32>
    %cst_35 = arith.constant dense<0xFF800000> : vector<10xf32>
    %72 = vector.multi_reduction <maximumf>, %71, %cst_35 [1] : vector<10x128xf32> to vector<10xf32>
    %73 = vector.shape_cast %72 : vector<10xf32> to vector<10x1xf32>
    %74 = vector.broadcast %73 : vector<10x1xf32> to vector<10x128xf32>
    %75 = arith.cmpf oeq, %71, %74 : vector<10x128xf32>
    %c128_i32_36 = arith.constant 128 : i32
    %76 = vector.broadcast %c128_i32_36 : i32 to vector<10x128xi32>
    %77 = arith.select %75, %18, %76 : vector<10x128xi1>, vector<10x128xi32>
    %cst_37 = arith.constant dense<2147483647> : vector<10xi32>
    %78 = vector.multi_reduction <minsi>, %77, %cst_37 [1] : vector<10x128xi32> to vector<10xi32>
    %79 = vector.shape_cast %78 : vector<10xi32> to vector<10x1xi32>
    %80 = arith.cmpi eq, %79, %7 : vector<10x1xi32>
    %81 = arith.extui %80 : vector<10x1xi1> to vector<10x1xi32>
    %82 = arith.sitofp %81 : vector<10x1xi32> to vector<10x1xf32>
    %83 = vector.shape_cast %82 : vector<10x1xf32> to vector<1x10x1xf32>
    %cst_38 = arith.constant dense<0.000000e+00> : vector<1xf32>
    %84 = vector.multi_reduction <add>, %83, %cst_38 [1, 2] : vector<1x10x1xf32> to vector<1xf32>
    %85 = vector.shape_cast %84 : vector<1xf32> to vector<1x1x1xf32>
    %86 = vector.extract %85[0, 0, 0] : f32 from vector<1x1x1xf32>
    %cst_39 = arith.constant 0.000000e+00 : f32
    %87 = vector.broadcast %86 : f32 to vector<1x128xf32>
    %88 = vector.broadcast %cst_39 : f32 to vector<1x128xf32>
    %89 = arith.select %68, %87, %88 : vector<1x128xi1>, vector<1x128xf32>
    %90 = arith.addf %43, %89 : vector<1x128xf32>
    %c1_i32_40 = arith.constant 1 : i32
    %cst_41 = arith.constant dense<0.000000e+00> : vector<1x128xf32>
    %91 = tpu.matmul %65, %9, %cst_41 {dimension_numbers = #tpu.dot_dimension_numbers<[1], [0], [0], [1], [0, 0, 1, 1], [], []>} : vector<1x128xf32>, vector<128x128xf32>, vector<1x128xf32> -> vector<1x128xf32>
    %92 = vector.broadcast %91 : vector<1x128xf32> to vector<5x128xf32>
    %93 = arith.addf %14, %92 : vector<5x128xf32>
    %cst_42 = arith.constant dense<0xFF800000> : vector<5xf32>
    %94 = vector.multi_reduction <maximumf>, %93, %cst_42 [1] : vector<5x128xf32> to vector<5xf32>
    %95 = vector.shape_cast %94 : vector<5xf32> to vector<5x1xf32>
    %96 = vector.broadcast %95 : vector<5x1xf32> to vector<5x128xf32>
    %97 = arith.subf %93, %96 : vector<5x128xf32>
    %98 = math.exp %97 : vector<5x128xf32>
    %cst_43 = arith.constant dense<0.000000e+00> : vector<5xf32>
    %99 = vector.multi_reduction <add>, %98, %cst_43 [1] : vector<5x128xf32> to vector<5xf32>
    %100 = vector.shape_cast %99 : vector<5xf32> to vector<5x1xf32>
    %101 = tpu.reciprocal %100 {approx = true} : vector<5x1xf32> -> vector<5x1xf32>
    %102 = vector.broadcast %101 : vector<5x1xf32> to vector<5x128xf32>
    %103 = arith.mulf %98, %102 : vector<5x128xf32>
    %104 = arith.subf %103, %5 : vector<5x128xf32>
    %cst_44 = arith.constant dense<0.000000e+00> : vector<128xf32>
    %105 = vector.multi_reduction <add>, %104, %cst_44 [0] : vector<5x128xf32> to vector<128xf32>
    %106 = vector.shape_cast %105 : vector<128xf32> to vector<1x128xf32>
    %cst_45 = arith.constant 2.000000e-01 : f32
    %107 = vector.broadcast %cst_45 : f32 to vector<1x128xf32>
    %108 = arith.mulf %106, %107 : vector<1x128xf32>
    %cst_46 = arith.constant dense<0.000000e+00> : vector<1x128xf32>
    %109 = tpu.matmul %108, %10, %cst_46 {dimension_numbers = #tpu.dot_dimension_numbers<[1], [0], [0], [1], [0, 0, 1, 1], [], []>} : vector<1x128xf32>, vector<128x128xf32>, vector<1x128xf32> -> vector<1x128xf32>
    %cst_47 = arith.constant 4.000000e-01 : f32
    %110 = vector.broadcast %cst_47 : f32 to vector<1x128xf32>
    %111 = arith.mulf %110, %109 : vector<1x128xf32>
    %112 = arith.subf %65, %111 : vector<1x128xf32>
    %c1_i32_48 = arith.constant 1 : i32
    %113 = arith.addi %c1_i32_40, %c1_i32_48 : i32
    %114 = vector.broadcast %113 : i32 to vector<1x128xi32>
    %115 = arith.cmpi eq, %19, %114 : vector<1x128xi32>
    %cst_49 = arith.constant dense<0.000000e+00> : vector<1x128xf32>
    %116 = tpu.matmul %112, %9, %cst_49 {dimension_numbers = #tpu.dot_dimension_numbers<[1], [0], [0], [1], [0, 0, 1, 1], [], []>} : vector<1x128xf32>, vector<128x128xf32>, vector<1x128xf32> -> vector<1x128xf32>
    %117 = vector.broadcast %116 : vector<1x128xf32> to vector<10x128xf32>
    %118 = arith.addf %17, %117 : vector<10x128xf32>
    %cst_50 = arith.constant dense<0xFF800000> : vector<10xf32>
    %119 = vector.multi_reduction <maximumf>, %118, %cst_50 [1] : vector<10x128xf32> to vector<10xf32>
    %120 = vector.shape_cast %119 : vector<10xf32> to vector<10x1xf32>
    %121 = vector.broadcast %120 : vector<10x1xf32> to vector<10x128xf32>
    %122 = arith.cmpf oeq, %118, %121 : vector<10x128xf32>
    %c128_i32_51 = arith.constant 128 : i32
    %123 = vector.broadcast %c128_i32_51 : i32 to vector<10x128xi32>
    %124 = arith.select %122, %18, %123 : vector<10x128xi1>, vector<10x128xi32>
    %cst_52 = arith.constant dense<2147483647> : vector<10xi32>
    %125 = vector.multi_reduction <minsi>, %124, %cst_52 [1] : vector<10x128xi32> to vector<10xi32>
    %126 = vector.shape_cast %125 : vector<10xi32> to vector<10x1xi32>
    %127 = arith.cmpi eq, %126, %7 : vector<10x1xi32>
    %128 = arith.extui %127 : vector<10x1xi1> to vector<10x1xi32>
    %129 = arith.sitofp %128 : vector<10x1xi32> to vector<10x1xf32>
    %130 = vector.shape_cast %129 : vector<10x1xf32> to vector<1x10x1xf32>
    %cst_53 = arith.constant dense<0.000000e+00> : vector<1xf32>
    %131 = vector.multi_reduction <add>, %130, %cst_53 [1, 2] : vector<1x10x1xf32> to vector<1xf32>
    %132 = vector.shape_cast %131 : vector<1xf32> to vector<1x1x1xf32>
    %133 = vector.extract %132[0, 0, 0] : f32 from vector<1x1x1xf32>
    %cst_54 = arith.constant 0.000000e+00 : f32
    %134 = vector.broadcast %133 : f32 to vector<1x128xf32>
    %135 = vector.broadcast %cst_54 : f32 to vector<1x128xf32>
    %136 = arith.select %115, %134, %135 : vector<1x128xi1>, vector<1x128xf32>
    %137 = arith.addf %90, %136 : vector<1x128xf32>
    %c2_i32 = arith.constant 2 : i32
    %cst_55 = arith.constant dense<0.000000e+00> : vector<1x128xf32>
    %138 = tpu.matmul %112, %9, %cst_55 {dimension_numbers = #tpu.dot_dimension_numbers<[1], [0], [0], [1], [0, 0, 1, 1], [], []>} : vector<1x128xf32>, vector<128x128xf32>, vector<1x128xf32> -> vector<1x128xf32>
    %139 = vector.broadcast %138 : vector<1x128xf32> to vector<5x128xf32>
    %140 = arith.addf %14, %139 : vector<5x128xf32>
    %cst_56 = arith.constant dense<0xFF800000> : vector<5xf32>
    %141 = vector.multi_reduction <maximumf>, %140, %cst_56 [1] : vector<5x128xf32> to vector<5xf32>
    %142 = vector.shape_cast %141 : vector<5xf32> to vector<5x1xf32>
    %143 = vector.broadcast %142 : vector<5x1xf32> to vector<5x128xf32>
    %144 = arith.subf %140, %143 : vector<5x128xf32>
    %145 = math.exp %144 : vector<5x128xf32>
    %cst_57 = arith.constant dense<0.000000e+00> : vector<5xf32>
    %146 = vector.multi_reduction <add>, %145, %cst_57 [1] : vector<5x128xf32> to vector<5xf32>
    %147 = vector.shape_cast %146 : vector<5xf32> to vector<5x1xf32>
    %148 = tpu.reciprocal %147 {approx = true} : vector<5x1xf32> -> vector<5x1xf32>
    %149 = vector.broadcast %148 : vector<5x1xf32> to vector<5x128xf32>
    %150 = arith.mulf %145, %149 : vector<5x128xf32>
    %151 = arith.subf %150, %5 : vector<5x128xf32>
    %cst_58 = arith.constant dense<0.000000e+00> : vector<128xf32>
    %152 = vector.multi_reduction <add>, %151, %cst_58 [0] : vector<5x128xf32> to vector<128xf32>
    %153 = vector.shape_cast %152 : vector<128xf32> to vector<1x128xf32>
    %cst_59 = arith.constant 2.000000e-01 : f32
    %154 = vector.broadcast %cst_59 : f32 to vector<1x128xf32>
    %155 = arith.mulf %153, %154 : vector<1x128xf32>
    %cst_60 = arith.constant dense<0.000000e+00> : vector<1x128xf32>
    %156 = tpu.matmul %155, %10, %cst_60 {dimension_numbers = #tpu.dot_dimension_numbers<[1], [0], [0], [1], [0, 0, 1, 1], [], []>} : vector<1x128xf32>, vector<128x128xf32>, vector<1x128xf32> -> vector<1x128xf32>
    %cst_61 = arith.constant 4.000000e-01 : f32
    %157 = vector.broadcast %cst_61 : f32 to vector<1x128xf32>
    %158 = arith.mulf %157, %156 : vector<1x128xf32>
    %159 = arith.subf %112, %158 : vector<1x128xf32>
    %c1_i32_62 = arith.constant 1 : i32
    %160 = arith.addi %c2_i32, %c1_i32_62 : i32
    %161 = vector.broadcast %160 : i32 to vector<1x128xi32>
    %162 = arith.cmpi eq, %19, %161 : vector<1x128xi32>
    %cst_63 = arith.constant dense<0.000000e+00> : vector<1x128xf32>
    %163 = tpu.matmul %159, %9, %cst_63 {dimension_numbers = #tpu.dot_dimension_numbers<[1], [0], [0], [1], [0, 0, 1, 1], [], []>} : vector<1x128xf32>, vector<128x128xf32>, vector<1x128xf32> -> vector<1x128xf32>
    %164 = vector.broadcast %163 : vector<1x128xf32> to vector<10x128xf32>
    %165 = arith.addf %17, %164 : vector<10x128xf32>
    %cst_64 = arith.constant dense<0xFF800000> : vector<10xf32>
    %166 = vector.multi_reduction <maximumf>, %165, %cst_64 [1] : vector<10x128xf32> to vector<10xf32>
    %167 = vector.shape_cast %166 : vector<10xf32> to vector<10x1xf32>
    %168 = vector.broadcast %167 : vector<10x1xf32> to vector<10x128xf32>
    %169 = arith.cmpf oeq, %165, %168 : vector<10x128xf32>
    %c128_i32_65 = arith.constant 128 : i32
    %170 = vector.broadcast %c128_i32_65 : i32 to vector<10x128xi32>
    %171 = arith.select %169, %18, %170 : vector<10x128xi1>, vector<10x128xi32>
    %cst_66 = arith.constant dense<2147483647> : vector<10xi32>
    %172 = vector.multi_reduction <minsi>, %171, %cst_66 [1] : vector<10x128xi32> to vector<10xi32>
    %173 = vector.shape_cast %172 : vector<10xi32> to vector<10x1xi32>
    %174 = arith.cmpi eq, %173, %7 : vector<10x1xi32>
    %175 = arith.extui %174 : vector<10x1xi1> to vector<10x1xi32>
    %176 = arith.sitofp %175 : vector<10x1xi32> to vector<10x1xf32>
    %177 = vector.shape_cast %176 : vector<10x1xf32> to vector<1x10x1xf32>
    %cst_67 = arith.constant dense<0.000000e+00> : vector<1xf32>
    %178 = vector.multi_reduction <add>, %177, %cst_67 [1, 2] : vector<1x10x1xf32> to vector<1xf32>
    %179 = vector.shape_cast %178 : vector<1xf32> to vector<1x1x1xf32>
    %180 = vector.extract %179[0, 0, 0] : f32 from vector<1x1x1xf32>
    %cst_68 = arith.constant 0.000000e+00 : f32
    %181 = vector.broadcast %180 : f32 to vector<1x128xf32>
    %182 = vector.broadcast %cst_68 : f32 to vector<1x128xf32>
    %183 = arith.select %162, %181, %182 : vector<1x128xi1>, vector<1x128xf32>
    %184 = arith.addf %137, %183 : vector<1x128xf32>
    %c3_i32 = arith.constant 3 : i32
    %c0_69 = arith.constant 0 : index
    %c0_70 = arith.constant 0 : index
    %c0_71 = arith.constant 0 : index
    %185 = vector.load %arg9[%c0_69, %c0_70, %c0_71] : memref<1x1x128xf32, #tpu.memory_space<vmem>>, vector<1x1x128xf32>
    %186 = vector.shape_cast %185 : vector<1x1x128xf32> to vector<1x128xf32>
    %187 = vector.shape_cast %184 : vector<1x128xf32> to vector<1x1x128xf32>
    tpu.vector_store %arg9[%c0_69, %c0_70, %c0_71], %187 {strides = array<i32>} : memref<1x1x128xf32, #tpu.memory_space<vmem>>, vector<1x1x128xf32>,
    return
  }
  func.func @transform_0(%arg0: i32) -> (i32, i32, i32) {
    %c0_i32 = arith.constant 0 : i32
    %c0_i32_0 = arith.constant 0 : i32
    %c0_i32_1 = arith.constant 0 : i32
    return %arg0, %c0_i32, %c0_i32_0 : i32, i32, i32
  }
  func.func @transform_1(%arg0: i32) -> (i32, i32, i32) {
    %c0_i32 = arith.constant 0 : i32
    %c0_i32_0 = arith.constant 0 : i32
    %c0_i32_1 = arith.constant 0 : i32
    return %arg0, %c0_i32, %c0_i32_0 : i32, i32, i32
  }
  func.func @transform_2(%arg0: i32) -> (i32, i32, i32) {
    %c0_i32 = arith.constant 0 : i32
    %c0_i32_0 = arith.constant 0 : i32
    %c0_i32_1 = arith.constant 0 : i32
    return %arg0, %c0_i32, %c0_i32_0 : i32, i32, i32
  }
  func.func @transform_3(%arg0: i32) -> (i32, i32, i32) {
    %c0_i32 = arith.constant 0 : i32
    %c0_i32_0 = arith.constant 0 : i32
    %c0_i32_1 = arith.constant 0 : i32
    return %arg0, %c0_i32, %c0_i32_0 : i32, i32, i32
  }
  func.func @transform_4(%arg0: i32) -> (i32, i32) {
    %c0_i32 = arith.constant 0 : i32
    %c0_i32_0 = arith.constant 0 : i32
    %c0_i32_1 = arith.constant 0 : i32
    return %c0_i32, %c0_i32_0 : i32, i32
  }
  func.func @transform_5(%arg0: i32) -> (i32, i32) {
    %c0_i32 = arith.constant 0 : i32
    %c0_i32_0 = arith.constant 0 : i32
    %c0_i32_1 = arith.constant 0 : i32
    return %c0_i32, %c0_i32_0 : i32, i32
  }
  func.func @transform_6(%arg0: i32) -> (i32, i32) {
    %c0_i32 = arith.constant 0 : i32
    %c0_i32_0 = arith.constant 0 : i32
    %c0_i32_1 = arith.constant 0 : i32
    return %c0_i32, %c0_i32_0 : i32, i32
  }
  func.func @transform_7(%arg0: i32) -> (i32, i32) {
    %c0_i32 = arith.constant 0 : i32
    %c0_i32_0 = arith.constant 0 : i32
    %c0_i32_1 = arith.constant 0 : i32
    return %c0_i32, %c0_i32_0 : i32, i32
  }
  func.func @transform_8(%arg0: i32) -> (i32, i32, i32) {
    %c0_i32 = arith.constant 0 : i32
    %c0_i32_0 = arith.constant 0 : i32
    %c0_i32_1 = arith.constant 0 : i32
    return %arg0, %c0_i32, %c0_i32_0 : i32, i32, i32
  }
}

</mosaic_0001>

<bundles_post_ra>
// kernel: meta_forward.2
= control target key start
LH: loop header
LB: loop body
LE: loop exit
PB: predicated region body
PF: predicated region fallthrough
CT: control target
= control target key end

     0   :  { %s806_s12 = smov 0   ;;  %s925_s0 = inlined_call_operand.vmem [shape: bf16[30,256,36], index: 0, kind: input, shape index: {}]   ;;  %s926_s1 = inlined_call_operand.vmem [shape: bf16[36,128], index: 1, kind: input, shape index: {}]   ;;  %s927_s2 = inlined_call_operand.vmem [shape: f32[1,128], index: 2, kind: input, shape index: {}]   ;;  %s928_s3 = inlined_call_operand.vmem [shape: f32[30,1,128], index: 3, kind: output, shape index: {}]  }
   0x1 LB: > { %s640_s13 = sadd.s32 4294967295, %s784_s12   ;;  %p644_p0 = scmp.ge.s32.totalorder %s784_s12, 1  ;;  %s784_s12 = sphi %s806_s12, %s13_s12  }
   0x2   : > { %p137_p1 = scmp.lt.s32.totalorder %s784_s12, 31 }
   0x4   : > { %p138_p2 = pnand %p644_p0, %p137_p1 }
   0x5   : > { %v759_v0 = vld [vmem:[%s926_s1] sm:$0xff] (!%p138_p2)   ;;  %v760_v1 = vld [vmem:[%s926_s1 + $0x8] sm:$0xff] (!%p138_p2)   ;;  %p159_p3 = scmp.lt.s32.totalorder (!%p138_p2), %s640_s13, 29  ;;  %v761_v2 = vld [vmem:[%s926_s1 + $0x10] ss:$0 sps:$4 sm:$0x33] (!%p138_p2)  }
   0x6   : > { %141 = sbr.rel (%p138_p2) target bundleno = 314 (0x13a), region = 32  ;;  %705 = vmatprep.subr.bf16.mxu0 (!%p138_p2), %v759_v0  ;;  %743 = vmatprep.subr.bf16.mxu1 (!%p138_p2), %v759_v0  ;;  %vm356_vm0 = vcmask (!%p138_p2), 1041408   ;;  %vm307_vm1 = vcmask (!%p138_p2), 293888   ;;  %v866_v20 = vld [vmem:[%s927_s2] ss:$0 sm:$0xff] (!%p138_p2) }
   0x7   : > { %706 = vmatpush3.bf16.msra.mxu0 (!%p138_p2), %v759_v0  ;;  %746 = vmatpush3.bf16.msra.mxu1 (!%p138_p2), %v759_v0  ;;  %v358_v4 = vsel (!%p138_p2), %vm356_vm0, %v761_v2, 0 }
   0x8   : > { %707 = vmatprep.subr.bf16.mxu0 (!%p138_p2), %v760_v1  ;;  %744 = vmatprep.subr.bf16.mxu1 (!%p138_p2), %v760_v1 }
   0xb   : > { %708 = vmatpush3.bf16.msra.mxu0 (!%p138_p2), %v760_v1  ;;  %747 = vmatpush3.bf16.msra.mxu1 (!%p138_p2), %v760_v1 }
   0xc   : > { %749 = vmatprep.subr.msk.bf16.mxu0 (!%p138_p2), %vm356_vm0, %v761_v2  ;;  %750 = vmatprep.subr.msk.bf16.mxu1 (!%p138_p2), %vm356_vm0, %v761_v2 }
   0xd   : > { %s930_s13 = smov (!%p159_p3, %s640_s13), 29 }
   0xe   : > { %s685_s20 = sshll.u32 %s930_s13, 7  ;;  %s166_s28 = scalar_lea.vmem %s928_s3, %s930_s13 }
   0xf   : > { %s829_s23 = scalar_lea.vmem %s925_s0, %s685_s20  ;;  %710 = vmatpush3.bf16.msra.mxu0 %v358_v4  ;;  %748 = vmatpush3.bf16.msra.mxu1 %v358_v4 }
  0x10   : > { %v762_v3 = vld [vmem:[%s829_s23] sm:$0xff]   ;;  %v763_v5 = vld [vmem:[%s829_s23 + $0x8] sm:$0xff]   ;;  %v764_v6 = vld [vmem:[%s829_s23 + $0x10] sm:$0xff]  }
  0x11   : > { %711 = vmatprep.mubr.msk.bf16.mxu0 %vm307_vm1, %v762_v3  ;;  %v770_v7 = vld [vmem:[%s829_s23 + $0x40] sm:$0xff]   ;;  %v771_v8 = vld [vmem:[%s829_s23 + $0x48] sm:$0xff]   ;;  %v772_v9 = vld [vmem:[%s829_s23 + $0x50] sm:$0xff]  }
  0x12   : > { %712 = vmatmul.mubr.msk.bf16.vlgmr.msra.gmra.mrb[0].mxu0 %vm307_vm1, %v763_v5  ;;  %727 = vmatprep.mubr.msk.bf16.mxu1 %vm307_vm1, %v770_v7  ;;  %v765_v10 = vld [vmem:[%s829_s23 + $0x18] sm:$0xff]   ;;  %v766_v11 = vld [vmem:[%s829_s23 + $0x20] sm:$0xff]   ;;  %v767_v14 = vld [vmem:[%s829_s23 + $0x28] sm:$0xff]  }
  0x13   : > { %715 = vmatprep.mubr.msk.bf16.mxu0 %vm307_vm1, %v764_v6  ;;  %728 = vmatmul.mubr.msk.bf16.vlgmr.msra.gmra.mrb[0].mxu1 %vm307_vm1, %v771_v8  ;;  %v773_v12 = vld [vmem:[%s829_s23 + $0x58] sm:$0xff]   ;;  %v774_v13 = vld [vmem:[%s829_s23 + $0x60] sm:$0xff]   ;;  %v768_v15 = vld [vmem:[%s829_s23 + $0x30] sm:$0xff]  }
  0x14   : > { %731 = vmatprep.mubr.msk.bf16.mxu1 %vm307_vm1, %v772_v9  ;;  %v775_v16 = vld [vmem:[%s829_s23 + $0x68] sm:$0xff]   ;;  %v776_v17 = vld [vmem:[%s829_s23 + $0x70] sm:$0xff]   ;;  %v769_v18 = vld [vmem:[%s829_s23 + $0x38] sm:$0xff]  }
  0x15   : > { %v777_v19 = vld [vmem:[%s829_s23 + $0x78] sm:$0xff]  }
  0x1a   : > { %716 = vmatmul.mubr.msk.bf16.gmra.mrb[4].mxu0 %vm307_vm1, %v765_v10 }
  0x1b   : > { %719 = vmatprep.mubr.msk.bf16.mxu0 %vm307_vm1, %v766_v11  ;;  %732 = vmatmul.mubr.msk.bf16.gmra.mrb[4].mxu1 %vm307_vm1, %v773_v12 }
  0x1c   : > { %735 = vmatprep.mubr.msk.bf16.mxu1 %vm307_vm1, %v774_v13 }
  0x22   : > { %720 = vmatmul.mubr.msk.bf16.gmra.mrb[8].mxu0 %vm307_vm1, %v767_v14 }
  0x23   : > { %723 = vmatprep.mubr.msk.bf16.mxu0 %vm307_vm1, %v768_v15  ;;  %736 = vmatmul.mubr.msk.bf16.gmra.mrb[8].mxu1 %vm307_vm1, %v775_v16 }
  0x24   : > { %739 = vmatprep.mubr.msk.bf16.mxu1 %vm307_vm1, %v776_v17 }
  0x2a   : > { %724 = vmatmul.mubr.msk.bf16.gmra.mrb[12].mxu0 %vm307_vm1, %v769_v18 }
  0x2b   : > { %740 = vmatmul.mubr.msk.bf16.gmra.mrb[12].mxu1 %vm307_vm1, %v777_v19 }
  0xe5   : > { %v713_v21 = vpop.f32.mrb[0].mxu0 }
  0xe6   : > { %v394_v22 = vpop.f32.mrb[1].mxu0  ;;  %v403_v26 = vadd.f32 %v713_v21, %v866_v20  ;;  %v871_v28 = vpop.f32.mrb[0].mxu1 }
  0xe7   : > { %v395_v23 = vadd.f32 %v866_v20, %v394_v22  ;;  %v714_v24 = vpop.f32.mrb[2].mxu0  ;;  %v873_v29 = vpop.f32.mrb[1].mxu1 }
  0xe8   : > { %v397_v25 = vpop.f32.mrb[3].mxu0  ;;  %v406_v31 = vadd.f32 %v714_v24, %v866_v20  ;;  %v876_v33 = vpop.f32.mrb[2].mxu1  ;;  %v523_v35 = vmax.f32 %v403_v26, 0.0 }
  0xe9   : > { %v398_v27 = vadd.f32 %v866_v20, %v397_v25  ;;  %v521_v30 = vmax.f32 %v395_v23, 0.0  ;;  %v878_v34 = vpop.f32.mrb[3].mxu1 }
  0xea   : > { %v524_v39 = vmax.f32 %v406_v31, 0.0 }
  0xeb   : > { %v522_v32 = vmax.f32 %v398_v27, 0.0 }
  0xed   : > { %v553_v36 = vadd.f32 %v522_v32, %v521_v30  ;;  %v717_v37 = vpop.f32.mrb[4].mxu0  ;;  %v459_v32 = vadd.f32 %v866_v20, %v873_v29 }
  0xee   : > { %v410_v38 = vpop.f32.mrb[5].mxu0  ;;  %v419_v44 = vadd.f32 %v717_v37, %v866_v20  ;;  %v883_v48 = vpop.f32.mrb[4].mxu1 }
  0xef   : > { %v554_v40 = vadd.f32 %v553_v36, %v523_v35  ;;  %v411_v41 = vadd.f32 %v866_v20, %v410_v38  ;;  %v718_v42 = vpop.f32.mrb[6].mxu0  ;;  %v474_v49 = vpop.f32.mrb[5].mxu1 }
  0xf0   : > { %v413_v43 = vpop.f32.mrb[7].mxu0  ;;  %v422_v51 = vadd.f32 %v718_v42, %v866_v20  ;;  %v886_v53 = vpop.f32.mrb[6].mxu1  ;;  %v527_v55 = vmax.f32 %v419_v44, 0.0  ;;  %v462_v42 = vadd.f32 %v866_v20, %v878_v34  ;;  %v475_v29 = vadd.f32 %v866_v20, %v474_v49 }
  0xf1   : > { %v525_v45 = vmax.f32 %v411_v41, 0.0  ;;  %v555_v46 = vadd.f32 %v554_v40, %v524_v39  ;;  %v414_v47 = vadd.f32 %v866_v20, %v413_v43  ;;  %v477_v54 = vpop.f32.mrb[7].mxu1  ;;  %v537_v41 = vmax.f32 %v459_v32, 0.0 }
  0xf2   : > { %v528_v59 = vmax.f32 %v422_v51, 0.0  ;;  %v467_v43 = vadd.f32 %v871_v28, %v866_v20  ;;  %v483_v34 = vadd.f32 %v883_v48, %v866_v20 }
  0xf3   : > { %v556_v50 = vadd.f32 %v555_v46, %v525_v45  ;;  %v526_v52 = vmax.f32 %v414_v47, 0.0  ;;  %v470_v46 = vadd.f32 %v876_v33, %v866_v20  ;;  %v538_v47 = vmax.f32 %v462_v42, 0.0 }
  0xf5   : > { %v557_v56 = vadd.f32 %v556_v50, %v526_v52  ;;  %v721_v57 = vpop.f32.mrb[8].mxu0  ;;  %v539_v50 = vmax.f32 %v467_v43, 0.0  ;;  %v540_v52 = vmax.f32 %v470_v46, 0.0 }
  0xf6   : > { %v426_v58 = vpop.f32.mrb[9].mxu0  ;;  %v435_v0 = vadd.f32 %v721_v57, %v866_v20  ;;  %v737_v4 = vpop.f32.mrb[8].mxu1  ;;  %v478_v57 = vadd.f32 %v866_v20, %v477_v54 }
  0xf7   : > { %v558_v60 = vadd.f32 %v557_v56, %v527_v55  ;;  %v427_v61 = vadd.f32 %v866_v20, %v426_v58  ;;  %v722_v62 = vpop.f32.mrb[10].mxu0  ;;  %v490_v5 = vpop.f32.mrb[9].mxu1  ;;  %v541_v56 = vmax.f32 %v475_v29, 0.0  ;;  %v499_v54 = vadd.f32 %v737_v4, %v866_v20 }
  0xf8   : > { %v429_v63 = vpop.f32.mrb[11].mxu0  ;;  %v438_v7 = vadd.f32 %v722_v62, %v866_v20  ;;  %v738_v9 = vpop.f32.mrb[10].mxu1  ;;  %v531_v11 = vmax.f32 %v435_v0, 0.0  ;;  %v491_v33 = vadd.f32 %v866_v20, %v490_v5 }
  0xf9   : > { %v529_v1 = vmax.f32 %v427_v61, 0.0  ;;  %v559_v2 = vadd.f32 %v558_v60, %v528_v59  ;;  %v430_v3 = vadd.f32 %v866_v20, %v429_v63  ;;  %v493_v10 = vpop.f32.mrb[11].mxu1  ;;  %v486_v59 = vadd.f32 %v886_v53, %v866_v20 }
  0xfa   : > { %v532_v15 = vmax.f32 %v438_v7, 0.0  ;;  %v542_v60 = vmax.f32 %v478_v57, 0.0  ;;  %v543_v61 = vmax.f32 %v483_v34, 0.0  ;;  %v545_v0 = vmax.f32 %v491_v33, 0.0 }
  0xfb   : > { %v560_v6 = vadd.f32 %v559_v2, %v529_v1  ;;  %v530_v8 = vmax.f32 %v430_v3, 0.0  ;;  %v544_v62 = vmax.f32 %v486_v59, 0.0  ;;  %v494_v1 = vadd.f32 %v866_v20, %v493_v10 }
  0xfc   : > { %v502_v48 = vadd.f32 %v738_v9, %v866_v20  ;;  %v547_v53 = vmax.f32 %v499_v54, 0.0 }
  0xfd   : > { %v561_v12 = vadd.f32 %v560_v6, %v530_v8  ;;  %v725_v13 = vpop.f32.mrb[12].mxu0  ;;  %v546_v6 = vmax.f32 %v494_v1, 0.0 }
  0xfe   : > { %v442_v14 = vpop.f32.mrb[13].mxu0  ;;  %v451_v21 = vadd.f32 %v725_v13, %v866_v20  ;;  %v741_v25 = vpop.f32.mrb[12].mxu1 }
  0xff   : > { %v562_v16 = vadd.f32 %v561_v12, %v531_v11  ;;  %v443_v17 = vadd.f32 %v866_v20, %v442_v14  ;;  %v726_v18 = vpop.f32.mrb[14].mxu0  ;;  %v506_v26 = vpop.f32.mrb[13].mxu1  ;;  %v548_v11 = vmax.f32 %v502_v48, 0.0  ;;  %v515_v14 = vadd.f32 %v741_v25, %v866_v20 }
 0x100   : > { %v445_v19 = vpop.f32.mrb[15].mxu0  ;;  %v454_v30 = vadd.f32 %v726_v18, %v866_v20  ;;  %v742_v35 = vpop.f32.mrb[14].mxu1  ;;  %v535_v37 = vmax.f32 %v451_v21, 0.0  ;;  %v507_v7 = vadd.f32 %v866_v20, %v506_v26 }
 0x101   : > { %v533_v22 = vmax.f32 %v443_v17, 0.0  ;;  %v563_v23 = vadd.f32 %v562_v16, %v532_v15  ;;  %v446_v24 = vadd.f32 %v866_v20, %v445_v19  ;;  %v509_v36 = vpop.f32.mrb[15].mxu1  ;;  %v518_v4 = vadd.f32 %v742_v35, %v866_v20 }
 0x102   : > { %v536_v39 = vmax.f32 %v454_v30, 0.0  ;;  %v549_v12 = vmax.f32 %v507_v7, 0.0  ;;  %v510_v13 = vadd.f32 %v866_v20, %v509_v36  ;;  %v551_v17 = vmax.f32 %v515_v14, 0.0 }
 0x103   : > { %v564_v27 = vadd.f32 %v563_v23, %v533_v22  ;;  %v534_v31 = vmax.f32 %v446_v24, 0.0  ;;  %v552_v18 = vmax.f32 %v518_v4, 0.0 }
 0x104   : > { %v550_v16 = vmax.f32 %v510_v13, 0.0 }
 0x105   : > { %v565_v38 = vadd.f32 %v564_v27, %v534_v31 }
 0x107   : > { %v566_v40 = vadd.f32 %v565_v38, %v535_v37 }
 0x109   : > { %v567_v44 = vadd.f32 %v566_v40, %v536_v39 }
 0x10b   : > { %v568_v45 = vadd.f32 %v567_v44, %v537_v41 }
 0x10d   : > { %v569_v51 = vadd.f32 %v568_v45, %v538_v47 }
 0x10f   : > { %v570_v55 = vadd.f32 %v569_v51, %v539_v50 }
 0x111   : > { %v571_v58 = vadd.f32 %v570_v55, %v540_v52 }
 0x113   : > { %v572_v28 = vadd.f32 %v571_v58, %v541_v56 }
 0x115   : > { %v573_v49 = vadd.f32 %v572_v28, %v542_v60 }
 0x117   : > { %v574_v63 = vadd.f32 %v573_v49, %v543_v61 }
 0x119   : > { %v575_v2 = vadd.f32 %v574_v63, %v544_v62 }
 0x11b   : > { %v576_v3 = vadd.f32 %v575_v2, %v545_v0 }
 0x11d   : > { %v577_v8 = vadd.f32 %v576_v3, %v546_v6 }
 0x11f   : > { %v578_v5 = vadd.f32 %v577_v8, %v547_v53 }
 0x121   : > { %v579_v10 = vadd.f32 %v578_v5, %v548_v11 }
 0x123   : > { %v580_v15 = vadd.f32 %v579_v10, %v549_v12 }
 0x125   : > { %v581_v9 = vadd.f32 %v580_v15, %v550_v16 }
 0x127   : > { %v582_v19 = vadd.f32 %v581_v9, %v551_v17 }
 0x129   : > { %v583_v21 = vadd.f32 %v582_v19, %v552_v18 }
 0x12b   : > { %v584_v22 = vrot.slane %v583_v21, 4 }
 0x12d   : > { %v585_v23 = vadd.f32 %v584_v22, %v583_v21 }
 0x12f   : > { %v586_v24 = vrot.slane %v585_v23, 2 }
 0x131   : > { %v587_v26 = vadd.f32 %v586_v24, %v585_v23 }
 0x133   : > { %v588_v27 = vrot.slane %v587_v26, 1 }
 0x135   : > { %v589_v30 = vadd.f32 %v588_v27, %v587_v26 }
 0x137   : > { %v591_v25 = vmul.f32 0.00390625, %v589_v30 }
 0x139   : > { %592 = vst [vmem:[%s166_s28] sm:$0x1] %v591_v25 }
 0x13a PF: > { %s13_s12 = sadd.s32 1, %s784_s12  }
 0x13b   : > { %p10_p4 = scmp.ge.s32.totalorder %s13_s12, 32  }
 0x13d   :  { %12 = sbr.rel (!%p10_p4) target bundleno = 1 (0x1), region = 62 }

// kernel: meta_forward.3
= control target key start
LH: loop header
LB: loop body
LE: loop exit
PB: predicated region body
PF: predicated region fallthrough
CT: control target
= control target key end

     0   :  { %s2278_s27 = smov 0   ;;  %s2757_s0 = inlined_call_operand.vmem [shape: f32[2,5,128], index: 0, kind: input, shape index: {}]   ;;  %s2758_s1 = inlined_call_operand.vmem [shape: f32[2,10,128], index: 1, kind: input, shape index: {}]   ;;  %s2759_s2 = inlined_call_operand.vmem [shape: f32[2,5,128], index: 2, kind: input, shape index: {}]   ;;  %s2760_s3 = inlined_call_operand.vmem [shape: s32[2,10,1], index: 3, kind: input, shape index: {}]   ;;  %s2761_s4 = inlined_call_operand.vmem [shape: f32[128,128], index: 4, kind: input, shape index: {}]   ;;  %s2762_s5 = inlined_call_operand.vmem [shape: f32[128,128], index: 5, kind: input, shape index: {}]   ;;  %s2763_s6 = inlined_call_operand.vmem [shape: f32[128,128], index: 6, kind: input, shape index: {}]   ;;  %s2764_s7 = inlined_call_operand.vmem [shape: f32[1,128], index: 7, kind: input, shape index: {}]   ;;  %s2765_s8 = inlined_call_operand.vmem [shape: f32[2,1,128], index: 8, kind: output, shape index: {}]  }
   0x1 LB: > { %s1474_s28 = sadd.s32 4294967295, %s2228_s27   ;;  %p1478_p0 = scmp.ge.s32.totalorder %s2228_s27, 1  ;;  %s2228_s27 = sphi %s2278_s27, %s18_s27  }
   0x2   : > { %p290_p1 = scmp.lt.s32.totalorder %s2228_s27, 3 }
   0x4   : > { %p291_p2 = pnand %p1478_p0, %p290_p1 }
   0x5   : > { %v362_v0 = vld [vmem:[%s2761_s4] sm:$0xff] (!%p291_p2)  ;;  %v363_v1 = vld [vmem:[%s2761_s4 + $0x8] sm:$0xff] (!%p291_p2)  ;;  %v364_v2 = vld [vmem:[%s2761_s4 + $0x10] sm:$0xff] (!%p291_p2)  ;;  %v2230_v3 = vmov (!%p291_p2), 0.0|0.0   ;;  %vm2231_vm0 = vmmov (!%p291_p2), 0   ;;  %v2232_v6 = vmov (!%p291_p2), 0.0   ;;  %v562_v60 = vlaneseq (!%p291_p2) }
   0x6   : > { %294 = sbr.rel (%p291_p2) target bundleno = 3230 (0xc9e), region = 52  ;;  %1967 = vmatprep.subr.bf16.mxu0 (!%p291_p2), %v2230_v3  ;;  %v1968_v4 = vpack.c.bf16 (!%p291_p2), %v363_v1, %v362_v0  ;;  %v365_v5 = vld [vmem:[%s2761_s4 + $0x18] sm:$0xff] (!%p291_p2)  ;;  %1684 = vmatprep.mubr.msk.f32.mxu0 (!%p291_p2), %vm2231_vm0, %v2232_v6  ;;  %p335_p3 = scmp.lt.s32.totalorder (!%p291_p2), %s1474_s28, 1  ;;  %v366_v8 = vld [vmem:[%s2761_s4 + $0x20] sm:$0xff] (!%p291_p2)  ;;  %v367_v9 = vld [vmem:[%s2761_s4 + $0x28] sm:$0xff] (!%p291_p2)  ;;  %vm703_vm1 = vcmask (!%p291_p2), 1044480  }
   0x7   : > { %v1971_v7 = vpack.c.bf16 (!%p291_p2), %v365_v5, %v364_v2  ;;  %v1974_v10 = vpack.c.bf16 (!%p291_p2), %v367_v9, %v366_v8  ;;  %v368_v11 = vld [vmem:[%s2761_s4 + $0x30] sm:$0xff] (!%p291_p2)  ;;  %v369_v12 = vld [vmem:[%s2761_s4 + $0x38] sm:$0xff] (!%p291_p2)  ;;  %v370_v15 = vld [vmem:[%s2761_s4 + $0x40] sm:$0xff] (!%p291_p2)  ;;  %v636_v61 = vshrl.u32 (!%p291_p2), %v562_v60, 7  ;;  %vm643_vm2 = vcmask (!%p291_p2), 1041408  }
   0x8   : > { %1969 = vmatpush3.bf16.msra.mxu0 (!%p291_p2), %v1968_v4  ;;  %1992 = vmatprep.subr.bf16.mxu1 (!%p291_p2), %v1968_v4  ;;  %v1977_v13 = vpack.c.bf16 (!%p291_p2), %v369_v12, %v368_v11  ;;  %v371_v16 = vld [vmem:[%s2761_s4 + $0x48] sm:$0xff] (!%p291_p2)  ;;  %v372_v18 = vld [vmem:[%s2761_s4 + $0x50] sm:$0xff] (!%p291_p2)  ;;  %v373_v19 = vld [vmem:[%s2761_s4 + $0x58] sm:$0xff] (!%p291_p2) }
   0x9   : > { %1970 = vmatprep.subr.bf16.mxu0 (!%p291_p2), %v2230_v3  ;;  %1994 = vmatpush3.bf16.msra.mxu1 (!%p291_p2), %v1968_v4  ;;  %v1980_v17 = vpack.c.bf16 (!%p291_p2), %v371_v16, %v370_v15  ;;  %v1983_v20 = vpack.c.bf16 (!%p291_p2), %v373_v19, %v372_v18  ;;  %v374_v21 = vld [vmem:[%s2761_s4 + $0x60] sm:$0xff] (!%p291_p2)  ;;  %v375_v22 = vld [vmem:[%s2761_s4 + $0x68] sm:$0xff] (!%p291_p2)  ;;  %v376_v24 = vld [vmem:[%s2761_s4 + $0x70] sm:$0xff] (!%p291_p2)  ;;  %v2475_v62 = vsub.s32 (!%p291_p2), 0, %v636_v61 }
   0xa   : > { %1996 = vmatprep.subr.bf16.mxu1 (!%p291_p2), %v1971_v7  ;;  %v1986_v23 = vpack.c.bf16 (!%p291_p2), %v375_v22, %v374_v21  ;;  %v377_v25 = vld [vmem:[%s2761_s4 + $0x78] sm:$0xff] (!%p291_p2)  ;;  %v378_v27 = vld [vmem:[%s2762_s5] sm:$0xff] (!%p291_p2)  ;;  %v379_v28 = vld [vmem:[%s2762_s5 + $0x8] sm:$0xff] (!%p291_p2) }
   0xb   : > { %v1989_v26 = vpack.c.bf16 (!%p291_p2), %v377_v25, %v376_v24  ;;  %v2367_v30 = vpack.c.bf16 (!%p291_p2), %v379_v28, %v378_v27  ;;  %v380_v31 = vld [vmem:[%s2762_s5 + $0x10] sm:$0xff] (!%p291_p2)  ;;  %v381_v32 = vld [vmem:[%s2762_s5 + $0x18] sm:$0xff] (!%p291_p2)  ;;  %v382_v35 = vld [vmem:[%s2762_s5 + $0x20] sm:$0xff] (!%p291_p2) }
   0xc   : > { %1972 = vmatpush3.bf16.msra.mxu0 (!%p291_p2), %v1971_v7  ;;  %v2379_v34 = vpack.c.bf16 (!%p291_p2), %v381_v32, %v380_v31  ;;  %v383_v36 = vld [vmem:[%s2762_s5 + $0x28] sm:$0xff] (!%p291_p2)  ;;  %v384_v38 = vld [vmem:[%s2762_s5 + $0x30] sm:$0xff] (!%p291_p2)  ;;  %v385_v39 = vld [vmem:[%s2762_s5 + $0x38] sm:$0xff] (!%p291_p2) }
   0xd   : > { %s2767_s28 = smov (!%p335_p3, %s1474_s28), 1  ;;  %1973 = vmatprep.subr.bf16.mxu0 %v2230_v3  ;;  %1998 = vmatpush3.bf16.msra.mxu1 %v1971_v7  ;;  %v2393_v37 = vpack.c.bf16 %v383_v36, %v382_v35  ;;  %v2403_v40 = vpack.c.bf16 %v385_v39, %v384_v38  ;;  %v386_v41 = vld [vmem:[%s2762_s5 + $0x40] sm:$0xff]  ;;  %v387_v42 = vld [vmem:[%s2762_s5 + $0x48] sm:$0xff]  ;;  %v388_v44 = vld [vmem:[%s2762_s5 + $0x50] sm:$0xff] }
   0xe   : > { %s1496_s19 = sshll.u32 %s2767_s28, 4  ;;  %2000 = vmatprep.subr.bf16.mxu1 %v1974_v10  ;;  %s1479_s24 = sshll.u32 %s2767_s28, 3  ;;  %v2413_v43 = vpack.c.bf16 %v387_v42, %v386_v41  ;;  %v389_v45 = vld [vmem:[%s2762_s5 + $0x58] sm:$0xff]  ;;  %v390_v47 = vld [vmem:[%s2762_s5 + $0x60] sm:$0xff]  ;;  %v391_v48 = vld [vmem:[%s2762_s5 + $0x68] sm:$0xff] }
   0xf   : > { %s2323_s26 = scalar_lea.vmem %s2758_s1, %s1496_s19  ;;  %s338_s30 = scalar_lea.vmem %s2757_s0, %s1479_s24  ;;  %v2423_v46 = vpack.c.bf16 %v389_v45, %v388_v44  ;;  %v2433_v49 = vpack.c.bf16 %v391_v48, %v390_v47  ;;  %v392_v50 = vld [vmem:[%s2762_s5 + $0x70] sm:$0xff]  ;;  %v393_v51 = vld [vmem:[%s2762_s5 + $0x78] sm:$0xff]  ;;  %v1485_v54 = vld [vmem:[%s2764_s7] ss:$0 sm:$0xff] }
  0x10   : > { %1975 = vmatpush3.bf16.msra.mxu0 %v1974_v10  ;;  %v357_v14 = vld [vmem:[%s2323_s26] sm:$0xff]  ;;  %v358_v33 = vld [vmem:[%s2323_s26 + $0x8] sm:$0x3]  ;;  %v2443_v52 = vpack.c.bf16 %v393_v51, %v392_v50  ;;  %v396_v15 = vld [vmem:[%s2763_s6 + $0x10] sm:$0xff]  ;;  %s347_s23 = scalar_lea.vmem %s2759_s2, %s1479_s24  ;;  %s352_s29 = scalar_lea.vmem %s2760_s3, %s1496_s19 }
  0x11   : > { %1976 = vmatprep.subr.bf16.mxu0 %v2230_v3  ;;  %2002 = vmatpush3.bf16.msra.mxu1 %v1974_v10  ;;  %v356_v29 = vld [vmem:[%s338_s30] sm:$0x1f]  ;;  %v395_v8 = vld [vmem:[%s2763_s6 + $0x8] sm:$0xff]  ;;  %v397_v16 = vld [vmem:[%s2763_s6 + $0x18] sm:$0xff]  ;;  %s355_s13 = scalar_lea.vmem %s2765_s8, %s2767_s28 }
  0x12   : > { %2004 = vmatprep.subr.bf16.mxu1 %v1977_v13  ;;  %1719 = vmatprep.mubr.f32.mxu1 %v357_v14  ;;  %v394_v7 = vld [vmem:[%s2763_s6] sm:$0xff]  ;;  %v399_v19 = vld [vmem:[%s2763_s6 + $0x28] sm:$0xff]  ;;  %v400_v21 = vld [vmem:[%s2763_s6 + $0x30] sm:$0xff] }
  0x13   : > { %v2491_v9 = vpack.c.bf16 %v395_v8, %v394_v7  ;;  %v398_v18 = vld [vmem:[%s2763_s6 + $0x20] sm:$0xff]  ;;  %v401_v22 = vld [vmem:[%s2763_s6 + $0x38] sm:$0xff]  ;;  %v403_v25 = vld [vmem:[%s2763_s6 + $0x48] sm:$0xff] }
  0x14   : > { %1978 = vmatpush3.bf16.msra.mxu0 %v1977_v13  ;;  %v402_v24 = vld [vmem:[%s2763_s6 + $0x40] sm:$0xff]  ;;  %v404_v27 = vld [vmem:[%s2763_s6 + $0x50] sm:$0xff]  ;;  %v405_v28 = vld [vmem:[%s2763_s6 + $0x58] sm:$0xff] }
  0x15   : > { %1979 = vmatprep.subr.bf16.mxu0 %v2230_v3  ;;  %2006 = vmatpush3.bf16.msra.mxu1 %v1977_v13  ;;  %v406_v31 = vld [vmem:[%s2763_s6 + $0x60] sm:$0xff]  ;;  %v407_v32 = vld [vmem:[%s2763_s6 + $0x68] sm:$0xff]  ;;  %v408_v35 = vld [vmem:[%s2763_s6 + $0x70] sm:$0xff] }
  0x16   : > { %2008 = vmatprep.subr.bf16.mxu1 %v1980_v17  ;;  %v409_v36 = vld [vmem:[%s2763_s6 + $0x78] sm:$0xff]  ;;  %v2571_v42 = vld [vmem:[%s347_s23] sm:$0x1f] }
  0x17   : > { %v2561_v38 = vpack.c.bf16 %v409_v36, %v408_v35 }
  0x18   : > { %1981 = vmatpush3.bf16.msra.mxu0 %v1980_v17 }
  0x19   : > { %1982 = vmatprep.subr.bf16.mxu0 %v2230_v3  ;;  %2010 = vmatpush3.bf16.msra.mxu1 %v1980_v17  ;;  %v2502_v17 = vpack.c.bf16 %v397_v16, %v396_v15 }
  0x1a   : > { %2012 = vmatprep.subr.bf16.mxu1 %v1983_v20 }
  0x1c   : > { %1984 = vmatpush3.bf16.msra.mxu0 %v1983_v20 }
  0x1d   : > { %1985 = vmatprep.subr.bf16.mxu0 %v2230_v3  ;;  %2014 = vmatpush3.bf16.msra.mxu1 %v1983_v20  ;;  %v2512_v20 = vpack.c.bf16 %v399_v19, %v398_v18 }
  0x1e   : > { %2016 = vmatprep.subr.bf16.mxu1 %v1986_v23 }
  0x20   : > { %1987 = vmatpush3.bf16.msra.mxu0 %v1986_v23 }
  0x21   : > { %1988 = vmatprep.subr.bf16.mxu0 %v2230_v3  ;;  %2018 = vmatpush3.bf16.msra.mxu1 %v1986_v23  ;;  %v2522_v23 = vpack.c.bf16 %v401_v22, %v400_v21 }
  0x22   : > { %2020 = vmatprep.subr.bf16.mxu1 %v1989_v26 }
  0x24   : > { %1990 = vmatpush3.bf16.msra.mxu0 %v1989_v26 }
  0x25   : > { %2023 = vmatprep.subr.bf16.mxu0 %v2230_v3  ;;  %2022 = vmatpush3.bf16.msra.mxu1 %v1989_v26  ;;  %v2532_v26 = vpack.c.bf16 %v403_v25, %v402_v24 }
  0x26   : > { %2047 = vmatprep.subr.bf16.mxu1 %v2230_v3 }
  0x27   : > { %1685 = vmatmul.mubr.f32.vlgmr.msra.gmra.mrb[0].mxu0 %v356_v29  ;;  %v2541_v29 = vpack.c.bf16 %v405_v28, %v404_v27 }
  0x28   : > { %2025 = vmatpush3.bf16.msra.mxu0 %v2367_v30  ;;  %1720 = vmatmul.mubr.f32.vlgmr.msra.gmra.mrb[0].mxu1 %v358_v33  ;;  %v2551_v33 = vpack.c.bf16 %v407_v32, %v406_v31 }
  0x29   : > { %2026 = vmatprep.subr.bf16.mxu0 %v2230_v3  ;;  %1754 = vmatprep.mubr.msk.f32.mxu0 %vm2231_vm0, %v2232_v6 }
  0x2a   : > { %1789 = vmatprep.mubr.msk.f32.mxu1 %vm2231_vm0, %v2232_v6  ;;  %2049 = vmatpush3.bf16.msra.mxu1 %v2491_v9 }
  0x2b   : > { %2050 = vmatprep.subr.bf16.mxu1 %v2230_v3 }
  0x2c   : > { %2028 = vmatpush3.bf16.msra.mxu0 %v2379_v34 }
  0x2d   : > { %2029 = vmatprep.subr.bf16.mxu0 %v2230_v3 }
  0x2e   : > { %2052 = vmatpush3.bf16.msra.mxu1 %v2502_v17 }
  0x2f   : > { %2053 = vmatprep.subr.bf16.mxu1 %v2230_v3 }
  0x30   : > { %2031 = vmatpush3.bf16.msra.mxu0 %v2393_v37 }
  0x31   : > { %2032 = vmatprep.subr.bf16.mxu0 %v2230_v3 }
  0x32   : > { %2055 = vmatpush3.bf16.msra.mxu1 %v2512_v20 }
  0x33   : > { %2056 = vmatprep.subr.bf16.mxu1 %v2230_v3 }
  0x34   : > { %2034 = vmatpush3.bf16.msra.mxu0 %v2403_v40 }
  0x35   : > { %2035 = vmatprep.subr.bf16.mxu0 %v2230_v3 }
  0x36   : > { %2058 = vmatpush3.bf16.msra.mxu1 %v2522_v23 }
  0x37   : > { %2059 = vmatprep.subr.bf16.mxu1 %v2230_v3 }
  0x38   : > { %2037 = vmatpush3.bf16.msra.mxu0 %v2413_v43 }
  0x39   : > { %2038 = vmatprep.subr.bf16.mxu0 %v2230_v3 }
  0x3a   : > { %2061 = vmatpush3.bf16.msra.mxu1 %v2532_v26 }
  0x3b   : > { %2062 = vmatprep.subr.bf16.mxu1 %v2230_v3 }
  0x3c   : > { %2040 = vmatpush3.bf16.msra.mxu0 %v2423_v46 }
  0x3d   : > { %2041 = vmatprep.subr.bf16.mxu0 %v2230_v3 }
  0x3e   : > { %2064 = vmatpush3.bf16.msra.mxu1 %v2541_v29 }
  0x3f   : > { %2065 = vmatprep.subr.bf16.mxu1 %v2230_v3 }
  0x40   : > { %2043 = vmatpush3.bf16.msra.mxu0 %v2433_v49 }
  0x41   : > { %2044 = vmatprep.subr.bf16.mxu0 %v2230_v3 }
  0x42   : > { %2067 = vmatpush3.bf16.msra.mxu1 %v2551_v33 }
  0x43   : > { %2068 = vmatprep.subr.bf16.mxu1 %v2230_v3 }
  0x44   : > { %2046 = vmatpush3.bf16.msra.mxu0 %v2443_v52 }
  0x45   : > { %2071 = vmatprep.subr.bf16.mxu0 %v2230_v3 }
  0x46   : > { %2070 = vmatpush3.bf16.msra.mxu1 %v2561_v38 }
  0x47   : > { %1755 = vmatmul.mubr.f32.vlgmr.msra.gmra.mrb[2].mxu0 %v2232_v6  ;;  %2095 = vmatprep.subr.bf16.mxu1 %v2230_v3 }
  0x48   : > { %2073 = vmatpush3.bf16.msra.mxu0 %v2367_v30  ;;  %1824 = vmatprep.mubr.msk.f32.mxu0 %vm2231_vm0, %v2232_v6 }
  0x49   : > { %2074 = vmatprep.subr.bf16.mxu0 %v2230_v3 }
  0x4c   : > { %2076 = vmatpush3.bf16.msra.mxu0 %v2379_v34 }
  0x4d   : > { %2077 = vmatprep.subr.bf16.mxu0 %v2230_v3 }
  0x50   : > { %2079 = vmatpush3.bf16.msra.mxu0 %v2393_v37 }
  0x51   : > { %2080 = vmatprep.subr.bf16.mxu0 %v2230_v3 }
  0x54   : > { %2082 = vmatpush3.bf16.msra.mxu0 %v2403_v40 }
  0x55   : > { %2083 = vmatprep.subr.bf16.mxu0 %v2230_v3 }
  0x58   : > { %2085 = vmatpush3.bf16.msra.mxu0 %v2413_v43 }
  0x59   : > { %2086 = vmatprep.subr.bf16.mxu0 %v2230_v3 }
  0x5c   : > { %2088 = vmatpush3.bf16.msra.mxu0 %v2423_v46 }
  0x5d   : > { %2089 = vmatprep.subr.bf16.mxu0 %v2230_v3 }
  0x60   : > { %2091 = vmatpush3.bf16.msra.mxu0 %v2433_v49 }
  0x61   : > { %2092 = vmatprep.subr.bf16.mxu0 %v2230_v3 }
  0x64   : > { %2094 = vmatpush3.bf16.msra.mxu0 %v2443_v52 }
  0x65   : > { %2119 = vmatprep.subr.bf16.mxu0 %v2230_v3 }
  0xfa   : > { %v483_v53 = vpop.f32.mrb[0].mxu0 }
  0xfb   : > { %v1686_v55 = vpop.f32.mrb[1].mxu0  ;;  %v1721_v56 = vpop.f32.mrb[0].mxu1  ;;  %v2477_v0 = vadd.f32 %v1485_v54, %v483_v53 }
  0xfc   : > { %v2470_v57 = vadd.f32 %v1721_v56, %v1485_v54  ;;  %v553_v58 = vpop.f32.mrb[1].mxu1 }
  0xfd   : > { %v2472_v59 = vadd.f32 %v1485_v54, %v553_v58 }
 0x11a   : > { %v631_v63 = vpop.f32.mrb[2].mxu0 }
 0x11b   : > { %v2480_v1 = vrot.slane %v631_v63, %v2475_v62  ;;  %v1756_v2 = vpop.f32.mrb[3].mxu0 }
 0x11d   : > { %v702_v4 = vadd.f32 %v2480_v1, %v2477_v0 }
 0x11f   : > { %v704_v5 = vsel %vm703_vm1, %v702_v4, -inf }
 0x120   : > { %705 = vmax.xlane.f32.xlu0 %v704_v5 }
 0x1ad   : > { %v706_v10 = vpop.xlane.xlu0 %705 }
 0x1ae   : > { %v707_v11 = vsub.f32 %v702_v4, %v706_v10 }
 0x1b0   : > { %v708_v12 = vmul.f32 1.442695, %v707_v11 }
 0x1b2   : > { %2210 = vpow2.f32 %v708_v12 }
 0x1bc   : > { %v2211_v13 = vpop.eup %2210 }
 0x1bd   : > { %v710_v14 = vsel %vm703_vm1, %v2211_v13, 0.0 }
 0x1be   : > { %711 = vadd.xlane.f32.xlu0 %v710_v14 }
 0x24b   : > { %v712_v39 = vpop.xlane.xlu0 %711 }
 0x24c   : > { %2212 = vrcp.f32 %v712_v39 }
 0x256   : > { %v2213_v41 = vpop.eup %2212 }
 0x257   : > { %v714_v44 = vmul.f32 %v2213_v41, %v2211_v13 }
 0x259   : > { %v715_v45 = vsub.f32 %v714_v44, %v2571_v42 }
 0x25b   : > { %v716_v47 = vsel %vm703_vm1, %v715_v45, 0.0 }
 0x25c   : > { %v717_v48 = vrot.slane %v716_v47, 4 }
 0x25e   : > { %v718_v50 = vadd.f32 %v717_v48, %v716_v47 }
 0x260   : > { %v719_v51 = vrot.slane %v718_v50, 2 }
 0x262   : > { %v720_v53 = vadd.f32 %v719_v51, %v718_v50 }
 0x264   : > { %v721_v54 = vrot.slane %v720_v53, 1 }
 0x266   : > { %v722_v55 = vadd.f32 %v721_v54, %v720_v53 }
 0x268   : > { %v723_v56 = vmul.f32 0.2, %v722_v55 }
 0x26a   : > { %1790 = vmatmul.mubr.f32.vlgmr.msra.gmra.mrb[2].mxu1 %v723_v56 }
 0x26b   : > { %2097 = vmatpush3.bf16.msra.mxu1 %v2491_v9  ;;  %1859 = vmatprep.mubr.msk.f32.mxu1 %vm2231_vm0, %v2232_v6 }
 0x26c   : > { %2098 = vmatprep.subr.bf16.mxu1 %v2230_v3 }
 0x26f   : > { %2100 = vmatpush3.bf16.msra.mxu1 %v2502_v17 }
 0x270   : > { %2101 = vmatprep.subr.bf16.mxu1 %v2230_v3 }
 0x273   : > { %2103 = vmatpush3.bf16.msra.mxu1 %v2512_v20 }
 0x274   : > { %2104 = vmatprep.subr.bf16.mxu1 %v2230_v3 }
 0x277   : > { %2106 = vmatpush3.bf16.msra.mxu1 %v2522_v23 }
 0x278   : > { %2107 = vmatprep.subr.bf16.mxu1 %v2230_v3 }
 0x27b   : > { %2109 = vmatpush3.bf16.msra.mxu1 %v2532_v26 }
 0x27c   : > { %2110 = vmatprep.subr.bf16.mxu1 %v2230_v3 }
 0x27f   : > { %2112 = vmatpush3.bf16.msra.mxu1 %v2541_v29 }
 0x280   : > { %2113 = vmatprep.subr.bf16.mxu1 %v2230_v3 }
 0x283   : > { %2115 = vmatpush3.bf16.msra.mxu1 %v2551_v33 }
 0x284   : > { %2116 = vmatprep.subr.bf16.mxu1 %v2230_v3 }
 0x287   : > { %2118 = vmatpush3.bf16.msra.mxu1 %v2561_v38 }
 0x288   : > { %2143 = vmatprep.subr.bf16.mxu1 %v2230_v3 }
 0x33d   : > { %v790_v58 = vpop.f32.mrb[2].mxu1 }
 0x33e   : > { %v2593_v61 = vmul.f32 0.4, %v790_v58  ;;  %v1791_v63 = vpop.f32.mrb[3].mxu1 }
 0x340   : > { %v795_v2 = vsub.f32 0.0, %v2593_v61 }
 0x342   : > { %1825 = vmatmul.mubr.f32.vlgmr.msra.gmra.mrb[4].mxu0 %v795_v2 }
 0x343   : > { %2121 = vmatpush3.bf16.msra.mxu0 %v2367_v30  ;;  %1894 = vmatprep.mubr.msk.f32.mxu0 %vm2231_vm0, %v2232_v6 }
 0x344   : > { %2122 = vmatprep.subr.bf16.mxu0 %v2230_v3 }
 0x347   : > { %2124 = vmatpush3.bf16.msra.mxu0 %v2379_v34 }
 0x348   : > { %2125 = vmatprep.subr.bf16.mxu0 %v2230_v3 }
 0x34b   : > { %2127 = vmatpush3.bf16.msra.mxu0 %v2393_v37 }
 0x34c   : > { %2128 = vmatprep.subr.bf16.mxu0 %v2230_v3 }
 0x34f   : > { %2130 = vmatpush3.bf16.msra.mxu0 %v2403_v40 }
 0x350   : > { %2131 = vmatprep.subr.bf16.mxu0 %v2230_v3 }
 0x353   : > { %2133 = vmatpush3.bf16.msra.mxu0 %v2413_v43 }
 0x354   : > { %2134 = vmatprep.subr.bf16.mxu0 %v2230_v3 }
 0x357   : > { %2136 = vmatpush3.bf16.msra.mxu0 %v2423_v46 }
 0x358   : > { %2137 = vmatprep.subr.bf16.mxu0 %v2230_v3 }
 0x35b   : > { %2139 = vmatpush3.bf16.msra.mxu0 %v2433_v49 }
 0x35c   : > { %2140 = vmatprep.subr.bf16.mxu0 %v2230_v3 }
 0x35f   : > { %2142 = vmatpush3.bf16.msra.mxu0 %v2443_v52 }
 0x360   : > { %2167 = vmatprep.subr.bf16.mxu0 %v2230_v3 }
 0x415   : > { %v863_v4 = vpop.f32.mrb[4].mxu0 }
 0x416   : > { %v2617_v5 = vrot.slane %v863_v4, %v2475_v62  ;;  %v1826_v7 = vpop.f32.mrb[5].mxu0 }
 0x418   : > { %v932_v8 = vadd.f32 %v2617_v5, %v2477_v0  ;;  %v872_v39 = vadd.f32 %v2617_v5, %v2470_v57 }
 0x41a   : > { %v933_v10 = vsel %vm703_vm1, %v932_v8, -inf  ;;  %v875_v41 = vsel %vm643_vm2, %v872_v39, -inf }
 0x41b   : > { %934 = vmax.xlane.f32.xlu1 %v933_v10 }
 0x4a8   : > { %v935_v11 = vpop.xlane.xlu1 %934 }
 0x4a9   : > { %v936_v12 = vsub.f32 %v932_v8, %v935_v11 }
 0x4ab   : > { %v937_v13 = vmul.f32 1.442695, %v936_v12 }
 0x4ad   : > { %2214 = vpow2.f32 %v937_v13 }
 0x4b7   : > { %v2215_v14 = vpop.eup %2214 }
 0x4b8   : > { %v939_v15 = vsel %vm703_vm1, %v2215_v14, 0.0 }
 0x4b9   : > { %940 = vadd.xlane.f32.xlu1 %v939_v15 }
 0x546   : > { %v941_v16 = vpop.xlane.xlu1 %940 }
 0x547   : > { %2216 = vrcp.f32 %v941_v16 }
 0x551   : > { %v2217_v18 = vpop.eup %2216 }
 0x552   : > { %v943_v19 = vmul.f32 %v2217_v18, %v2215_v14 }
 0x554   : > { %v944_v21 = vsub.f32 %v943_v19, %v2571_v42 }
 0x556   : > { %v945_v22 = vsel %vm703_vm1, %v944_v21, 0.0 }
 0x557   : > { %v946_v24 = vrot.slane %v945_v22, 4 }
 0x559   : > { %v947_v25 = vadd.f32 %v946_v24, %v945_v22 }
 0x55b   : > { %v948_v27 = vrot.slane %v947_v25, 2 }
 0x55d   : > { %v949_v28 = vadd.f32 %v948_v27, %v947_v25 }
 0x55f   : > { %v950_v31 = vrot.slane %v949_v28, 1 }
 0x561   : > { %v951_v32 = vadd.f32 %v950_v31, %v949_v28 }
 0x563   : > { %v952_v35 = vmul.f32 0.2, %v951_v32 }
 0x565   : > { %1860 = vmatmul.mubr.f32.vlgmr.msra.gmra.mrb[4].mxu1 %v952_v35 }
 0x566   : > { %2145 = vmatpush3.bf16.msra.mxu1 %v2491_v9  ;;  %1929 = vmatprep.mubr.msk.f32.mxu1 %vm2231_vm0, %v2232_v6 }
 0x567   : > { %2146 = vmatprep.subr.bf16.mxu1 %v2230_v3 }
 0x56a   : > { %2148 = vmatpush3.bf16.msra.mxu1 %v2502_v17 }
 0x56b   : > { %2149 = vmatprep.subr.bf16.mxu1 %v2230_v3 }
 0x56e   : > { %2151 = vmatpush3.bf16.msra.mxu1 %v2512_v20 }
 0x56f   : > { %2152 = vmatprep.subr.bf16.mxu1 %v2230_v3 }
 0x572   : > { %2154 = vmatpush3.bf16.msra.mxu1 %v2522_v23 }
 0x573   : > { %2155 = vmatprep.subr.bf16.mxu1 %v2230_v3 }
 0x576   : > { %2157 = vmatpush3.bf16.msra.mxu1 %v2532_v26  ;;  %v640_v26 = vadd.f32 %v2480_v1, %v2470_v57 }
 0x577   : > { %2158 = vmatprep.subr.bf16.mxu1 %v2230_v3 }
 0x57a   : > { %2160 = vmatpush3.bf16.msra.mxu1 %v2541_v29 }
 0x57b   : > { %2161 = vmatprep.subr.bf16.mxu1 %v2230_v3 }
 0x57e   : > { %2163 = vmatpush3.bf16.msra.mxu1 %v2551_v33 }
 0x57f   : > { %2164 = vmatprep.subr.bf16.mxu1 %v2230_v3 }
 0x582   : > { %2166 = vmatpush3.bf16.msra.mxu1 %v2561_v38 }
 0x638   : > { %v1019_v9 = vpop.f32.mrb[4].mxu1 }
 0x639   : > { %v1023_v17 = vmul.f32 0.4, %v1019_v9  ;;  %v1861_v20 = vpop.f32.mrb[5].mxu1 }
 0x63b   : > { %v2644_v23 = vsub.f32 %v795_v2, %v1023_v17 }
 0x63d   : > { %1895 = vmatmul.mubr.f32.vlgmr.msra.gmra.mrb[6].mxu0 %v2644_v23 }
 0x63e   : > { %2169 = vmatpush3.bf16.msra.mxu0 %v2367_v30  ;;  %1964 = vmatprep.mubr.msk.f32.mxu0 %vm2231_vm0, %v2232_v6 }
 0x63f   : > { %2170 = vmatprep.subr.bf16.mxu0 %v2230_v3 }
 0x642   : > { %2172 = vmatpush3.bf16.msra.mxu0 %v2379_v34 }
 0x643   : > { %2173 = vmatprep.subr.bf16.mxu0 %v2230_v3 }
 0x646   : > { %2175 = vmatpush3.bf16.msra.mxu0 %v2393_v37 }
 0x647   : > { %2176 = vmatprep.subr.bf16.mxu0 %v2230_v3 }
 0x64a   : > { %2178 = vmatpush3.bf16.msra.mxu0 %v2403_v40 }
 0x64b   : > { %2179 = vmatprep.subr.bf16.mxu0 %v2230_v3 }
 0x64e   : > { %2181 = vmatpush3.bf16.msra.mxu0 %v2413_v43 }
 0x64f   : > { %2182 = vmatprep.subr.bf16.mxu0 %v2230_v3 }
 0x652   : > { %2184 = vmatpush3.bf16.msra.mxu0 %v2423_v46  ;;  %v644_v46 = vsel %vm643_vm2, %v640_v26, -inf }
 0x653   : > { %2185 = vmatprep.subr.bf16.mxu0 %v2230_v3 }
 0x656   : > { %2187 = vmatpush3.bf16.msra.mxu0 %v2433_v49 }
 0x657   : > { %2188 = vmatprep.subr.bf16.mxu0 %v2230_v3  ;;  %v639_v3 = vadd.f32 %v2480_v1, %v2472_v59  ;;  %v871_v1 = vadd.f32 %v2617_v5, %v2472_v59 }
 0x65a   : > { %2190 = vmatpush3.bf16.msra.mxu0 %v2443_v52 }
 0x710   : > { %v1092_v30 = vpop.f32.mrb[6].mxu0 }
 0x711   : > { %v1099_v34 = vrot.slane %v1092_v30, %v2475_v62  ;;  %v1896_v37 = vpop.f32.mrb[7].mxu0 }
 0x713   : > { %v1161_v40 = vadd.f32 %v1099_v34, %v2477_v0  ;;  %v1101_v49 = vadd.f32 %v1099_v34, %v2470_v57  ;;  %v1100_v44 = vadd.f32 %v1099_v34, %v2472_v59 }
 0x715   : > { %v1162_v43 = vsel %vm703_vm1, %v1161_v40, -inf  ;;  %v1104_v52 = vsel %vm643_vm2, %v1101_v49, -inf }
 0x716   : > { %1163 = vmax.xlane.f32.xlu0 %v1162_v43 }
 0x71a   : > { %645 = vmax.xlane.f32.xlu0 %v644_v46 }
 0x71e   : > { %641 = vmax.xlane.f32.xlu0 %v639_v3 }
 0x722   : > { %1105 = vmax.xlane.f32.xlu0 %v1104_v52 }
 0x7a3   : > { %v1164_v0 = vpop.xlane.xlu0 %1163 }
 0x7a4   : > { %v1165_v29 = vsub.f32 %v1161_v40, %v1164_v0 }
 0x7a6   : > { %v1166_v33 = vmul.f32 1.442695, %v1165_v29 }
 0x7a7   : > { %v646_v8 = vpop.xlane.xlu0 %645 }
 0x7a8   : > { %2218 = vpow2.f32 %v1166_v33  ;;  %vm648_vm3 = vcmp.eq.f32.partialorder %v640_v26, %v646_v8 }
 0x7ab   : > { %v642_v11 = vpop.xlane.xlu0 %641 }
 0x7ac   : > { %vm647_vm4 = vcmp.eq.f32.partialorder %v639_v3, %v642_v11 }
 0x7af   : > { %v1106_v14 = vpop.xlane.xlu0 %1105 }
 0x7b0   : > { %vm1108_vm6 = vcmp.eq.f32.partialorder %v1101_v49, %v1106_v14 }
 0x7b2   : > { %v2219_v36 = vpop.eup %2218 }
 0x7b3   : > { %v1168_v38 = vsel %vm703_vm1, %v2219_v36, 0.0 }
 0x7b4   : > { %1169 = vadd.xlane.f32.xlu1 %v1168_v38 }
 0x7b8   : > { %876 = vmax.xlane.f32.xlu1 %v875_v41 }
 0x7bc   : > { %873 = vmax.xlane.f32.xlu1 %v871_v1 }
 0x7c0   : > { %1102 = vmax.xlane.f32.xlu1 %v1100_v44 }
 0x841   : > { %v1170_v45 = vpop.xlane.xlu1 %1169 }
 0x842   : > { %2220 = vrcp.f32 %v1170_v45 }
 0x845   : > { %v877_v10 = vpop.xlane.xlu1 %876 }
 0x846   : > { %vm879_vm5 = vcmp.eq.f32.partialorder %v872_v39, %v877_v10 }
 0x849   : > { %v874_v13 = vpop.xlane.xlu1 %873 }
 0x84a   : > { %vm878_vm7 = vcmp.eq.f32.partialorder %v871_v1, %v874_v13 }
 0x84c   : > { %v2221_v47 = vpop.eup %2220 }
 0x84d   : > { %v1172_v48 = vmul.f32 %v2221_v47, %v2219_v36 }
 0x84f   : > { %v1173_v50 = vsub.f32 %v1172_v48, %v2571_v42  ;;  %v2685_v42 = vand.u32 127, %v562_v60  ;;  %v1103_v60 = vpop.xlane.xlu1 %1102 }
 0x850   : > { %vm1107_vm8 = vcmp.eq.f32.partialorder %v1100_v44, %v1103_v60 }
 0x851   : > { %v1174_v51 = vsel %vm703_vm1, %v1173_v50, 0.0  ;;  %v650_v12 = vsel %vm648_vm3, %v2685_v42, 128  ;;  %v649_v18 = vsel %vm647_vm4, %v2685_v42, 128  ;;  %v881_v19 = vsel %vm879_vm5, %v2685_v42, 128 }
 0x852   : > { %v1175_v53 = vrot.slane %v1174_v51, 4  ;;  %v665_v15 = vsel %vm643_vm2, %v650_v12, 2147483647  ;;  %v896_v28 = vsel %vm643_vm2, %v881_v19, 2147483647  ;;  %v652_v31 = vshra.s32 %v649_v18, 16 }
 0x853   : > { %v667_v27 = vshra.s32 %v665_v15, 16  ;;  %v1110_v32 = vsel %vm1108_vm6, %v2685_v42, 128  ;;  %v880_v35 = vsel %vm878_vm7, %v2685_v42, 128  ;;  %v898_v17 = vshra.s32 %v896_v28, 16 }
 0x854   : > { %v1176_v54 = vadd.f32 %v1175_v53, %v1174_v51  ;;  %v1125_v20 = vsel %vm643_vm2, %v1110_v32, 2147483647  ;;  %v651_v29 = vand.u32 65535, %v649_v18  ;;  %v666_v1 = vand.u32 65535, %v665_v15  ;;  %v2720_v32 = vld [vmem:[%s352_s29] sm:$0xff] }
 0x855   : > { %v900_v30 = vcvt.s32.f32 %v898_v17  ;;  %v1127_v34 = vshra.s32 %v1125_v20, 16  ;;  %v882_v45 = vand.u32 65535, %v880_v35  ;;  %vm686_vm4 = vcmask 7168  }
 0x856   : > { %v1177_v55 = vrot.slane %v1176_v54, 2  ;;  %v653_v48 = vcvt.s32.f32 %v651_v29  ;;  %v668_v53 = vcvt.s32.f32 %v666_v1  ;;  %vm688_vm5 = vcmask 1024  }
 0x857   : > { %v1129_v43 = vcvt.s32.f32 %v1127_v34 }
 0x858   : > { %v1178_v56 = vadd.f32 %v1177_v55, %v1176_v54  ;;  %v897_v54 = vand.u32 65535, %v896_v28 }
 0x85a   : > { %v1179_v58 = vrot.slane %v1178_v56, 1 }
 0x85c   : > { %v1180_v61 = vadd.f32 %v1179_v58, %v1178_v56  ;;  %v884_v58 = vcvt.s32.f32 %v882_v45 }
 0x85e   : > { %v1181_v63 = vmul.f32 0.2, %v1180_v61 }
 0x860   : > { %1930 = vmatmul.mubr.f32.vlgmr.msra.gmra.mrb[6].mxu1 %v1181_v63 }
 0x933   : > { %v1248_v2 = vpop.f32.mrb[6].mxu1 }
 0x934   : > { %v1252_v4 = vmul.f32 0.4, %v1248_v2  ;;  %v1931_v5 = vpop.f32.mrb[7].mxu1 }
 0x935   : > { %v1126_v5 = vand.u32 65535, %v1125_v20 }
 0x936   : > { %v1253_v7 = vsub.f32 %v2644_v23, %v1252_v4  ;;  %v883_v23 = vshra.s32 %v880_v35, 16  ;;  %v899_v4 = vcvt.s32.f32 %v897_v54 }
 0x937   : > { %v1128_v11 = vcvt.s32.f32 %v1126_v5 }
 0x938   : > { %1965 = vmatmul.mubr.f32.vlgmr.msra.gmra.mrb[8].mxu0 %v1253_v7  ;;  %v885_v37 = vcvt.s32.f32 %v883_v23 }
 0xa0b   : > { %v1321_v16 = vpop.f32.mrb[8].mxu0 }
 0xa0c   : > { %v1328_v21 = vrot.slane %v1321_v16, %v2475_v62  ;;  %v1966_v22 = vpop.f32.mrb[9].mxu0  ;;  %v669_v62 = vcvt.s32.f32 %v667_v27 }
 0xa0e   : > { %v1329_v24 = vadd.f32 %v1328_v21, %v2472_v59  ;;  %v1330_v25 = vadd.f32 %v1328_v21, %v2470_v57  ;;  %v654_v59 = vcvt.s32.f32 %v652_v31  ;;  %v1109_v57 = vsel %vm1107_vm8, %v2685_v42, 128 }
 0xa0f   : > { %v1112_v40 = vshra.s32 %v1109_v57, 16  ;;  %v1111_v55 = vand.u32 65535, %v1109_v57 }
 0xa10   : > { %1331 = vmax.xlane.f32.xlu1 %v1329_v24  ;;  %v1333_v9 = vsel %vm643_vm2, %v1330_v25, -inf }
 0xa11   : > { %1334 = vmax.xlane.f32.xlu0 %v1333_v9  ;;  %v1114_v26 = vcvt.s32.f32 %v1112_v40  ;;  %v1113_v8 = vcvt.s32.f32 %v1111_v55 }
 0xa14   : > { %670 = vmin.xlane.f32.xlu1 %v669_v62 }
 0xa15   : > { %655 = vmin.xlane.f32.xlu0 %v654_v59 }
 0xa18   : > { %901 = vmin.xlane.f32.xlu1 %v900_v30 }
 0xa19   : > { %886 = vmin.xlane.f32.xlu0 %v885_v37 }
 0xa1c   : > { %1130 = vmin.xlane.f32.xlu1 %v1129_v43 }
 0xa1d   : > { %1115 = vmin.xlane.f32.xlu0 %v1114_v26 }
 0xa9d   : > { %v1332_v46 = vpop.xlane.xlu1 %1331 }
 0xa9e   : > { %vm1336_vm9 = vcmp.eq.f32.partialorder %v1329_v24, %v1332_v46  ;;  %v1335_v3 = vpop.xlane.xlu0 %1334 }
 0xa9f   : > { %v1338_v49 = vsel %vm1336_vm9, %v2685_v42, 128  ;;  %vm1337_vm10 = vcmp.eq.f32.partialorder %v1330_v25, %v1335_v3 }
 0xaa0   : > { %v1339_v52 = vsel %vm1337_vm10, %v2685_v42, 128  ;;  %v1341_v0 = vshra.s32 %v1338_v49, 16  ;;  %v1340_v13 = vand.u32 65535, %v1338_v49 }
 0xaa1   : > { %v1354_v33 = vsel %vm643_vm2, %v1339_v52, 2147483647  ;;  %v671_v36 = vpop.xlane.xlu1 %670 }
 0xaa2   : > { %v656_v38 = vpop.xlane.xlu0 %655  ;;  %v1343_v39 = vcvt.s32.f32 %v1341_v0  ;;  %v1356_v41 = vshra.s32 %v1354_v33, 16  ;;  %vm672_vm12 = vcmp.eq.f32.partialorder %v669_v62, %v671_v36  ;;  %v1355_v14 = vand.u32 65535, %v1354_v33 }
 0xaa3   : > { %vm657_vm11 = vcmp.eq.f32.partialorder %v654_v59, %v656_v38  ;;  %v673_v56 = vsel %vm672_vm12, %v668_v53, inf  ;;  %v1342_v16 = vcvt.s32.f32 %v1340_v13  ;;  %v662_v18 = vcvt.f32.s32 %v656_v38  ;;  %v361_v59 = vld [vmem:[%s352_s29 + $0x8] sm:$0x3] }
 0xaa4   : > { %1344 = vmin.xlane.f32.xlu0 %v1343_v39  ;;  %v1358_v44 = vcvt.s32.f32 %v1356_v41  ;;  %v658_v51 = vsel %vm657_vm11, %v653_v48, inf  ;;  %v1357_v22 = vcvt.s32.f32 %v1355_v14  ;;  %v677_v60 = vcvt.f32.s32 %v671_v36 }
 0xaa5   : > { %v2703_v47 = vpop.xlane.xlu1 %901  ;;  %v663_v28 = vshll.u32 %v662_v18, 16 }
 0xaa6   : > { %v887_v50 = vpop.xlane.xlu0 %886  ;;  %1359 = vmin.xlane.f32.xlu1 %v1358_v44  ;;  %vm903_vm14 = vcmp.eq.f32.partialorder %v900_v30, %v2703_v47  ;;  %v908_v35 = vcvt.f32.s32 %v2703_v47  ;;  %v678_v62 = vshll.u32 %v677_v60, 16 }
 0xaa7   : > { %vm888_vm13 = vcmp.eq.f32.partialorder %v885_v37, %v887_v50  ;;  %v904_v7 = vsel %vm903_vm14, %v899_v4, inf  ;;  %v893_v24 = vcvt.f32.s32 %v887_v50  ;;  %vm564_vm14 = vcmp.eq.s32.totalorder %v2685_v42, 0 }
 0xaa8   : > { %659 = vmin.xlane.f32.xlu0 %v658_v51  ;;  %v889_v2 = vsel %vm888_vm13, %v884_v58, inf  ;;  %v909_v40 = vshll.u32 %v908_v35, 16  ;;  %vm796_vm13 = vcmp.eq.s32.totalorder %v2685_v42, 1 }
 0xaa9   : > { %v2706_v63 = vpop.xlane.xlu1 %1130  ;;  %v894_v23 = vshll.u32 %v893_v24, 16 }
 0xaaa   : > { %v1116_v61 = vpop.xlane.xlu0 %1115  ;;  %674 = vmin.xlane.f32.xlu1 %v673_v56  ;;  %vm1132_vm0 = vcmp.eq.f32.partialorder %v1129_v43, %v2706_v63  ;;  %v1137_v46 = vcvt.f32.s32 %v2706_v63 }
 0xaab   : > { %vm1117_vm15 = vcmp.eq.f32.partialorder %v1114_v26, %v1116_v61  ;;  %v1133_v12 = vsel %vm1132_vm0, %v1128_v11, inf  ;;  %v1122_v57 = vcvt.f32.s32 %v1116_v61  ;;  %vm1254_vm0 = vcmp.eq.s32.totalorder %v2685_v42, 3 }
 0xaac   : > { %890 = vmin.xlane.f32.xlu0 %v889_v2  ;;  %v1118_v10 = vsel %vm1117_vm15, %v1113_v8, inf  ;;  %v1138_v45 = vshll.u32 %v1137_v46, 16  ;;  %vm1025_vm15 = vcmp.eq.s32.totalorder %v2685_v42, 2 }
 0xaad   : > { %v1123_v52 = vshll.u32 %v1122_v57, 16 }
 0xaae   : > { %905 = vmin.xlane.f32.xlu1 %v904_v7 }
 0xab0   : > { %1119 = vmin.xlane.f32.xlu0 %v1118_v10 }
 0xab2   : > { %1134 = vmin.xlane.f32.xlu1 %v1133_v12 }
 0xb31   : > { %v2709_v15 = vpop.xlane.xlu0 %1344 }
 0xb32   : > { %vm1346_vm1 = vcmp.eq.f32.partialorder %v1343_v39, %v2709_v15  ;;  %v1351_v4 = vcvt.f32.s32 %v2709_v15 }
 0xb33   : > { %v2712_v19 = vpop.xlane.xlu1 %1359  ;;  %v1347_v21 = vsel %vm1346_vm1, %v1342_v16, inf }
 0xb34   : > { %1348 = vmin.xlane.f32.xlu0 %v1347_v21  ;;  %vm1361_vm2 = vcmp.eq.f32.partialorder %v1358_v44, %v2712_v19  ;;  %v1366_v5 = vcvt.f32.s32 %v2712_v19  ;;  %v1352_v8 = vshll.u32 %v1351_v4, 16 }
 0xb35   : > { %v660_v25 = vpop.xlane.xlu0 %659  ;;  %v1362_v27 = vsel %vm1361_vm2, %v1357_v22, inf }
 0xb36   : > { %v661_v31 = vcvt.f32.s32 %v660_v25  ;;  %1363 = vmin.xlane.f32.xlu1 %v1362_v27  ;;  %v1367_v12 = vshll.u32 %v1366_v5, 16 }
 0xb37   : > { %v675_v9 = vpop.xlane.xlu1 %674 }
 0xb38   : > { %v664_v17 = vadd.s32 %v663_v28, %v661_v31  ;;  %v676_v20 = vcvt.f32.s32 %v675_v9 }
 0xb39   : > { %v891_v30 = vpop.xlane.xlu0 %890 }
 0xb3a   : > { %v679_v34 = vadd.s32 %v678_v62, %v676_v20  ;;  %v892_v37 = vcvt.f32.s32 %v891_v30  ;;  %vm680_vm3 = vcmp.eq.s32.totalorder %v664_v17, %v2720_v32 }
 0xb3b   : > { %v906_v43 = vpop.xlane.xlu1 %905  ;;  %v1486_v26 = vsel %vm680_vm3, 1.0, %v2232_v6 }
 0xb3c   : > { %v895_v3 = vadd.s32 %v894_v23, %v892_v37  ;;  %v907_v49 = vcvt.f32.s32 %v906_v43  ;;  %vm681_vm6 = vcmp.eq.s32.totalorder %v679_v34, %v361_v59  ;;  %v687_v33 = vsel %vm686_vm4, %v1486_v26, 0.0 }
 0xb3d   : > { %v1120_v0 = vpop.xlane.xlu0 %1119  ;;  %v1487_v29 = vsel %vm681_vm6, 1.0, %v2232_v6 }
 0xb3e   : > { %v910_v36 = vadd.s32 %v909_v40, %v907_v49  ;;  %v1121_v38 = vcvt.f32.s32 %v1120_v0  ;;  %v689_v39 = vsel %vm688_vm5, %v1487_v29, 0.0  ;;  %vm911_vm7 = vcmp.eq.s32.totalorder %v895_v3, %v2720_v32 }
 0xb3f   : > { %v1135_v41 = vpop.xlane.xlu1 %1134  ;;  %v690_v1 = vadd.f32 %v689_v39, %v687_v33  ;;  %v1488_v44 = vsel %vm911_vm7, 1.0, %v2232_v6 }
 0xb40   : > { %v1124_v47 = vadd.s32 %v1123_v52, %v1121_v38  ;;  %v1136_v48 = vcvt.f32.s32 %v1135_v41  ;;  %vm912_vm8 = vcmp.eq.s32.totalorder %v910_v36, %v361_v59  ;;  %v917_v53 = vsel %vm686_vm4, %v1488_v44, 0.0 }
 0xb41   : > { %691 = vadd.xlane.f32.xlu0 %v690_v1  ;;  %v1489_v50 = vsel %vm912_vm8, 1.0, %v2232_v6 }
 0xb42   : > { %v1139_v51 = vadd.s32 %v1138_v45, %v1136_v48  ;;  %v918_v54 = vsel %vm688_vm5, %v1489_v50, 0.0  ;;  %vm1140_vm9 = vcmp.eq.s32.totalorder %v1124_v47, %v2720_v32 }
 0xb43   : > { %v919_v55 = vadd.f32 %v918_v54, %v917_v53  ;;  %v1490_v56 = vsel %vm1140_vm9, 1.0, %v2232_v6 }
 0xb44   : > { %vm1141_vm10 = vcmp.eq.s32.totalorder %v1139_v51, %v361_v59  ;;  %v1146_v61 = vsel %vm686_vm4, %v1490_v56, 0.0 }
 0xb45   : > { %920 = vadd.xlane.f32.xlu1 %v919_v55  ;;  %v1491_v58 = vsel %vm1141_vm10, 1.0, %v2232_v6 }
 0xb46   : > { %v1147_v63 = vsel %vm688_vm5, %v1491_v58, 0.0 }
 0xb47   : > { %v1148_v2 = vadd.f32 %v1147_v63, %v1146_v61 }
 0xb49   : > { %1149 = vadd.xlane.f32.xlu0 %v1148_v2 }
 0xbc1   : > { %v1349_v7 = vpop.xlane.xlu0 %1348 }
 0xbc2   : > { %v1350_v10 = vcvt.f32.s32 %v1349_v7 }
 0xbc3   : > { %v1364_v11 = vpop.xlane.xlu1 %1363 }
 0xbc4   : > { %v1353_v13 = vadd.s32 %v1352_v8, %v1350_v10  ;;  %v1365_v14 = vcvt.f32.s32 %v1364_v11 }
 0xbc6   : > { %v1368_v16 = vadd.s32 %v1367_v12, %v1365_v14  ;;  %vm1369_vm11 = vcmp.eq.s32.totalorder %v1353_v13, %v2720_v32 }
 0xbc7   : > { %v1492_v18 = vsel %vm1369_vm11, 1.0, %v2232_v6 }
 0xbc8   : > { %vm1370_vm12 = vcmp.eq.s32.totalorder %v1368_v16, %v361_v59  ;;  %v1375_v22 = vsel %vm686_vm4, %v1492_v18, 0.0 }
 0xbc9   : > { %v1493_v21 = vsel %vm1370_vm12, 1.0, %v2232_v6 }
 0xbca   : > { %v1376_v15 = vsel %vm688_vm5, %v1493_v21, 0.0 }
 0xbcb   : > { %v1377_v19 = vadd.f32 %v1376_v15, %v1375_v22 }
 0xbcd   : > { %1378 = vadd.xlane.f32.xlu1 %v1377_v19 }
 0xbce   : > { %v692_v60 = vpop.xlane.xlu0 %691 }
 0xbcf   : > { %v693_v24 = vrot.slane %v692_v60, 4 }
 0xbd1   : > { %v694_v25 = vadd.f32 %v693_v24, %v692_v60 }
 0xbd2   : > { %v921_v27 = vpop.xlane.xlu1 %920 }
 0xbd3   : > { %v695_v28 = vrot.slane %v694_v25, 2  ;;  %v922_v31 = vrot.slane %v921_v27, 4 }
 0xbd5   : > { %v923_v35 = vadd.f32 %v922_v31, %v921_v27  ;;  %v696_v9 = vadd.f32 %v695_v28, %v694_v25 }
 0xbd6   : > { %v1150_v32 = vpop.xlane.xlu0 %1149 }
 0xbd7   : > { %v924_v62 = vrot.slane %v923_v35, 2  ;;  %v1151_v17 = vrot.slane %v1150_v32, 4  ;;  %v697_v20 = vrot.slane %v696_v9, 1 }
 0xbd9   : > { %v1152_v59 = vadd.f32 %v1151_v17, %v1150_v32  ;;  %v698_v6 = vadd.f32 %v697_v20, %v696_v9  ;;  %v925_v23 = vadd.f32 %v924_v62, %v923_v35 }
 0xbdb   : > { %v1153_v57 = vrot.slane %v1152_v59, 2  ;;  %2191 = vpush %v698_v6  ;;  %v926_v30 = vrot.slane %v925_v23, 1 }
 0xbdd   : > { %v1154_v34 = vadd.f32 %v1153_v57, %v1152_v59  ;;  %v927_v37 = vadd.f32 %v926_v30, %v925_v23 }
 0xbdf   : > { %2193 = vpush %v927_v37  ;;  %v1155_v40 = vrot.slane %v1154_v34, 1 }
 0xbe1   : > { %v1156_v43 = vadd.f32 %v1155_v40, %v1154_v34 }
 0xbe3   : > { %2195 = vpush %v1156_v43 }
 0xc0c   : > { %s2192_s19 = spop %2191 }
 0xc0d   : > { %v700_v36 = vstv %s2192_s19 }
 0xc0e   : > { %v701_v41 = vsel %vm564_vm14, %v700_v36, 0.0 }
 0xc10   : > { %s2194_s30 = spop %2193 }
 0xc11   : > { %v929_v33 = vstv %s2194_s30 }
 0xc12   : > { %v930_v39 = vsel %vm796_vm13, %v929_v33, 0.0 }
 0xc13   : > { %v931_v44 = vadd.f32 %v930_v39, %v701_v41 }
 0xc14   : > { %s2196_s9 = spop %2195 }
 0xc15   : > { %v1158_v38 = vstv %s2196_s9 }
 0xc16   : > { %v1159_v1 = vsel %vm1025_vm15, %v1158_v38, 0.0 }
 0xc17   : > { %v1160_v45 = vadd.f32 %v1159_v1, %v931_v44 }
 0xc5a   : > { %v1379_v26 = vpop.xlane.xlu1 %1378 }
 0xc5b   : > { %v1380_v46 = vrot.slane %v1379_v26, 4 }
 0xc5d   : > { %v1381_v3 = vadd.f32 %v1380_v46, %v1379_v26 }
 0xc5f   : > { %v1382_v49 = vrot.slane %v1381_v3, 2 }
 0xc61   : > { %v1383_v52 = vadd.f32 %v1382_v49, %v1381_v3 }
 0xc63   : > { %v1384_v0 = vrot.slane %v1383_v52, 1 }
 0xc65   : > { %v1385_v29 = vadd.f32 %v1384_v0, %v1383_v52 }
 0xc67   : > { %2197 = vpush %v1385_v29 }
 0xc98   : > { %s2198_s10 = spop %2197 }
 0xc99   : > { %v1387_v47 = vstv %s2198_s10 }
 0xc9a   : > { %v1388_v48 = vsel %vm1254_vm0, %v1387_v47, 0.0 }
 0xc9b   : > { %v1389_v50 = vadd.f32 %v1388_v48, %v1160_v45 }
 0xc9d   : > { %1390 = vst [vmem:[%s355_s13] sm:$0x1] %v1389_v50 }
 0xc9e PF: > { %s18_s27 = sadd.s32 1, %s2228_s27  }
 0xc9f   : > { %p15_p4 = scmp.ge.s32.totalorder %s18_s27, 4  }
 0xca1   :  { %17 = sbr.rel (!%p15_p4) target bundleno = 1 (0x1), region = 91 }

</bundles_post_ra>
